<compile_context>
chip_gen: v5e
topology: v5e:2x2
jax: 0.10.0
libtpu: 0.0.40
codegen_flags: <defaults>
</compile_context>

<pallas_src>
import functools

import jax
import jax.numpy as jnp
import numpy as np
from jax import lax
from jax.experimental import pallas as pl
from jax.experimental.pallas import tpu as pltpu

_LANE = 128


def _rnn_lstm_kernel(x_ref, wih_ref, whh_ref, b_ref, w12_ref, b12_ref,
                     out_ref, gx_scr, hs_scr, *, seq_len, n_batch, hidden, hidden_p):
    T, N, H, Hp = seq_len, n_batch, hidden, hidden_p

    # ---- hoisted input projection: ONE dense (T*N, E) @ (E, 4*Hp) matmul + bias ----
    # (off the serial path; replaces 8 tiny M=8 matmuls + 8 bias adds inside the loop)
    gx_scr[...] = (jnp.dot(x_ref[...], wih_ref[...],
                           preferred_element_type=jnp.float32)
                   + b_ref[...])                                   # (T*N, 4*Hp) f32

    whh = whh_ref[...]                                             # (H, 4*Hp) bf16, loaded once

    def step(t, carry):
        h, c = carry                                               # (N, Hp) f32 each
        row = pl.multiple_of(t * N, N)
        # only the real H lanes of h feed the recurrence matmul (K = 64, not 128)
        gates = (gx_scr[pl.ds(row, N), :]
                 + jnp.dot(h[:, :H].astype(jnp.bfloat16), whh,
                           preferred_element_type=jnp.float32))    # (N, 4*Hp) f32
        # each gate block is exactly Hp = 128 lanes -> full-vreg elementwise ops
        i_g = jax.nn.sigmoid(gates[:, 0 * Hp:1 * Hp])
        f_g = jax.nn.sigmoid(gates[:, 1 * Hp:2 * Hp])
        g_g = jnp.tanh(gates[:, 2 * Hp:3 * Hp])
        o_g = jax.nn.sigmoid(gates[:, 3 * Hp:4 * Hp])
        c_new = f_g * c + i_g * g_g
        h_new = o_g * jnp.tanh(c_new)
        hs_scr[pl.ds(row, N), :] = h_new                           # stash for fused projection
        return (h_new, c_new)

    h0 = jnp.zeros((N, Hp), jnp.float32)
    lax.fori_loop(0, T, step, (h0, h0), unroll=True)               # short fixed trip count

    # ---- fused fc1@fc2 projection over all steps: (T*N, Hp) @ (Hp, Vp), lane-dense store
    out_ref[...] = (jnp.dot(hs_scr[...].astype(jnp.bfloat16), w12_ref[...],
                            preferred_element_type=jnp.float32)
                    + b12_ref[...])


def rnn_stackoverflow_forward(input_seq, params):
    """input_seq: (T, N) int32. Returns logits of shape (T, V, N)."""
    emb_tbl = params["emb"]               # (Vext, E)
    w_ih = params["w_ih"]                 # (E, 4H)
    w_hh = params["w_hh"]                 # (H, 4H)
    b_ih = params["b_ih"]                 # (1, 4H)
    b_hh = params["b_hh"]                 # (1, 4H)
    w1 = params["w1"]                     # (H, E)
    b1 = params["b1"]                     # (1, E)
    w2 = params["w2"]                     # (E, V)
    b2 = params["b2"]                     # (1, V)

    T, N = input_seq.shape
    E = emb_tbl.shape[1]
    H = w_hh.shape[0]
    V = w2.shape[1]

    Hp = pl.cdiv(H, _LANE) * _LANE        # gate lane-padding (64 -> 128)
    Vp = pl.cdiv(V, _LANE) * _LANE        # lane-dense output stores

    # ---- wrapper-side glue (tiny, runs once) ----
    # embedding gather (padding_idx=0 row is all-zeros by construction); flatten time x batch
    embeds = jnp.take(emb_tbl, input_seq, axis=0).reshape(T * N, E).astype(jnp.bfloat16)

    b_lstm = b_ih + b_hh                  # fold LSTM biases
    w12 = w1 @ w2                         # fc1 . fc2 fusion (no nonlinearity between in the module)
    b12 = b1 @ w2 + b2                    # (1, V)

    def pad_gates(w):
        # (rows, 4H) -> (rows, 4*Hp): zero-pad each gate block i|f|g|o to Hp lanes.
        blocks = jnp.split(w, 4, axis=1)
        return jnp.concatenate(
            [jnp.pad(blk, ((0, 0), (0, Hp - H))) for blk in blocks], axis=1)

    wih_p = pad_gates(w_ih).astype(jnp.bfloat16)                 # (E, 4*Hp) bf16
    whh_p = pad_gates(w_hh).astype(jnp.bfloat16)                 # (H, 4*Hp) bf16 (no row pad)
    b_p = pad_gates(b_lstm)                                      # (1, 4*Hp) f32
    w12_p = jnp.pad(w12, ((0, Hp - H), (0, Vp - V))).astype(jnp.bfloat16)   # (Hp, Vp) bf16
    b12_p = jnp.pad(b12, ((0, 0), (0, Vp - V)))                  # (1, Vp) f32

    kernel = functools.partial(_rnn_lstm_kernel, seq_len=T, n_batch=N,
                               hidden=H, hidden_p=Hp)
    full = lambda shape: pl.BlockSpec(shape, lambda i: (0,) * len(shape))

    out2d = pl.pallas_call(
        kernel,
        out_shape=jax.ShapeDtypeStruct((T * N, Vp), jnp.float32),
        grid_spec=pltpu.PrefetchScalarGridSpec(
            num_scalar_prefetch=0,
            grid=(1,),                                           # single step: no pipeline overhead
            in_specs=[
                full((T * N, E)),                                # all embeds resident (~4 KB bf16)
                full(wih_p.shape),
                full(whh_p.shape),
                full(b_p.shape),
                full(w12_p.shape),
                full(b12_p.shape),
            ],
            out_specs=pl.BlockSpec((T * N, Vp), lambda i: (0, 0)),
            scratch_shapes=[
                pltpu.VMEM((T * N, 4 * Hp), jnp.float32),        # precomputed x-gates slab
                pltpu.VMEM((T * N, Hp), jnp.float32),            # hidden-state slab
            ],
        ),
        compiler_params=pltpu.CompilerParams(
            dimension_semantics=("arbitrary",),
        ),
    )(embeds, wih_p, whh_p, b_p, w12_p, b12_p)

    # (T*N, Vp) -> (T, N, V) -> rearrange 'batch length vocab -> batch vocab length'
    logits = out2d[:, :V].reshape(T, N, V)
    return jnp.transpose(logits, (0, 2, 1))


def make_params(key, vocab_size=124, num_oov_buckets=1, embedding_size=32, latent_size=64):
    Vext = vocab_size + 3 + num_oov_buckets
    E, H = embedding_size, latent_size
    ks = jax.random.split(key, 9)
    s_lstm = 1.0 / np.sqrt(H)
    s_fc1 = 1.0 / np.sqrt(H)
    s_fc2 = 1.0 / np.sqrt(E)

    emb = 0.1 * jax.random.normal(ks[0], (Vext, E), jnp.float32)
    emb = emb.at[0].set(0.0)   # padding_idx=0

    params = {
        "emb": emb,
        # stored pre-transposed relative to PyTorch (out_features, in_features)
        "w_ih": jax.random.uniform(ks[1], (E, 4 * H), jnp.float32, -s_lstm, s_lstm),
        "w_hh": jax.random.uniform(ks[2], (H, 4 * H), jnp.float32, -s_lstm, s_lstm),
        "b_ih": jax.random.uniform(ks[3], (1, 4 * H), jnp.float32, -s_lstm, s_lstm),
        "b_hh": jax.random.uniform(ks[4], (1, 4 * H), jnp.float32, -s_lstm, s_lstm),
        "w1": jax.random.uniform(ks[5], (H, E), jnp.float32, -s_fc1, s_fc1),
        "b1": jax.random.uniform(ks[6], (1, E), jnp.float32, -s_fc1, s_fc1),
        "w2": jax.random.uniform(ks[7], (E, Vext), jnp.float32, -s_fc2, s_fc2),
        "b2": jax.random.uniform(ks[8], (1, Vext), jnp.float32, -s_fc2, s_fc2),
    }
    return params


def reference_forward(input_seq, params):
    """Pure-JAX reference (gate order i, f, g, o like PyTorch; unfused fc1/fc2, all f32)."""
    emb = jnp.take(params["emb"], input_seq, axis=0)         # (T, N, E)
    H = params["w_hh"].shape[0]
    N = input_seq.shape[1]

    def cell(carry, x_t):
        h, c = carry
        gates = (x_t @ params["w_ih"] + h @ params["w_hh"]
                 + params["b_ih"] + params["b_hh"])
        i = jax.nn.sigmoid(gates[:, 0 * H:1 * H])
        f = jax.nn.sigmoid(gates[:, 1 * H:2 * H])
        g = jnp.tanh(gates[:, 2 * H:3 * H])
        o = jax.nn.sigmoid(gates[:, 3 * H:4 * H])
        c_new = f * c + i * g
        h_new = o * jnp.tanh(c_new)
        return (h_new, c_new), h_new

    h0 = jnp.zeros((N, H), jnp.float32)
    (_, _), hs = jax.lax.scan(cell, (h0, h0), emb)            # (T, N, H)
    fc1 = hs @ params["w1"] + params["b1"]
    logits = fc1 @ params["w2"] + params["b2"]                # (T, N, V)
    return jnp.transpose(logits, (0, 2, 1))                   # (T, V, N)


if __name__ == "__main__":
    key = jax.random.PRNGKey(0)
    k_p, k_x = jax.random.split(key)

    # small shapes consistent with the module (vocab_size+3+num_oov = 128, E=32, H=64)
    vocab_size, num_oov = 124, 1
    Vext = vocab_size + 3 + num_oov
    T, N = 8, 8   # input_seq dims (dim0 = LSTM time, dim1 = LSTM batch)

    params = make_params(k_p, vocab_size=vocab_size, num_oov_buckets=num_oov,
                         embedding_size=32, latent_size=64)
    input_seq = jax.random.randint(k_x, (T, N), 0, Vext, dtype=jnp.int32)

    out = jax.block_until_ready(rnn_stackoverflow_forward(input_seq, params))
    ref = jax.block_until_ready(reference_forward(input_seq, params))

    assert out.shape == (T, Vext, N), out.shape
    np.testing.assert_allclose(np.asarray(out), np.asarray(ref), rtol=5e-2, atol=5e-2)

    print("KERNEL_OK")
</pallas_src>

<mosaic_0001>
module attributes {stable_mosaic.version = 11 : i64} {
  func.func @_rnn_lstm_kernel(%arg0: i32, %arg1: memref<64x32xbf16, #tpu.memory_space<vmem>>, %arg2: memref<32x512xbf16, #tpu.memory_space<vmem>>, %arg3: memref<64x512xbf16, #tpu.memory_space<vmem>>, %arg4: memref<1x512xf32, #tpu.memory_space<vmem>>, %arg5: memref<128x128xbf16, #tpu.memory_space<vmem>>, %arg6: memref<1x128xf32, #tpu.memory_space<vmem>>, %arg7: memref<64x128xf32, #tpu.memory_space<vmem>>, %arg8: memref<64x512xf32, #tpu.memory_space<vmem>>, %arg9: memref<64x128xf32, #tpu.memory_space<vmem>>) attributes {dimension_semantics = [#tpu.dimension_semantics<arbitrary>], iteration_bounds = array<i64: 1>, scalar_prefetch = 0 : i64, scratch_operands = 2 : i64, tpu.core_type = #tpu.core_type<tc>, window_params = [{pipeline_mode = #tpu.pipeline_mode<synchronous>, transform_indices = @transform_0, window_bounds = array<i64: 64, 32>}, {pipeline_mode = #tpu.pipeline_mode<synchronous>, transform_indices = @transform_1, window_bounds = array<i64: 32, 512>}, {pipeline_mode = #tpu.pipeline_mode<synchronous>, transform_indices = @transform_2, window_bounds = array<i64: 64, 512>}, {pipeline_mode = #tpu.pipeline_mode<synchronous>, transform_indices = @transform_3, window_bounds = array<i64: 1, 512>}, {pipeline_mode = #tpu.pipeline_mode<synchronous>, transform_indices = @transform_4, window_bounds = array<i64: 128, 128>}, {pipeline_mode = #tpu.pipeline_mode<synchronous>, transform_indices = @transform_5, window_bounds = array<i64: 1, 128>}, {pipeline_mode = #tpu.pipeline_mode<synchronous>, transform_indices = @transform_6, window_bounds = array<i64: 64, 128>}]} {
    %c0 = arith.constant 0 : index
    %c0_0 = arith.constant 0 : index
    %0 = vector.load %arg1[%c0, %c0_0] : memref<64x32xbf16, #tpu.memory_space<vmem>>, vector<64x32xbf16>
    %c0_1 = arith.constant 0 : index
    %c0_2 = arith.constant 0 : index
    %1 = vector.load %arg2[%c0_1, %c0_2] : memref<32x512xbf16, #tpu.memory_space<vmem>>, vector<32x512xbf16>
    %cst = arith.constant dense<0.000000e+00> : vector<64x512xf32>
    %2 = tpu.matmul %0, %1, %cst {dimension_numbers = #tpu.dot_dimension_numbers<[1], [0], [0], [1], [0, 0, 1, 1], [], []>} : vector<64x32xbf16>, vector<32x512xbf16>, vector<64x512xf32> -> vector<64x512xf32>
    %c0_3 = arith.constant 0 : index
    %c0_4 = arith.constant 0 : index
    %3 = vector.load %arg4[%c0_3, %c0_4] : memref<1x512xf32, #tpu.memory_space<vmem>>, vector<1x512xf32>
    %4 = vector.broadcast %3 : vector<1x512xf32> to vector<64x512xf32>
    %5 = arith.addf %2, %4 : vector<64x512xf32>
    %c0_5 = arith.constant 0 : index
    %c0_6 = arith.constant 0 : index
    %6 = vector.load %arg8[%c0_5, %c0_6] : memref<64x512xf32, #tpu.memory_space<vmem>>, vector<64x512xf32>
    tpu.vector_store %arg8[%c0_5, %c0_6], %5 {strides = array<i32>} : memref<64x512xf32, #tpu.memory_space<vmem>>, vector<64x512xf32>,
    %c0_7 = arith.constant 0 : index
    %c0_8 = arith.constant 0 : index
    %7 = vector.load %arg3[%c0_7, %c0_8] : memref<64x512xbf16, #tpu.memory_space<vmem>>, vector<64x512xbf16>
    %cst_9 = arith.constant 0.000000e+00 : f32
    %8 = vector.broadcast %cst_9 : f32 to vector<8x128xf32>
    %c0_i32 = arith.constant 0 : i32
    %c8_i32 = arith.constant 8 : i32
    %9 = arith.muli %c0_i32, %c8_i32 : i32
    %10 = tpu.assume_multiple %9, 8 : i32
    %11 = arith.index_cast %10 : i32 to index
    %c0_10 = arith.constant 0 : index
    %12 = vector.load %arg8[%11, %c0_10] : memref<64x512xf32, #tpu.memory_space<vmem>>, vector<8x512xf32>
    %13 = vector.extract_strided_slice %8 {offsets = [0, 0], sizes = [8, 64], strides = [1, 1]} : vector<8x128xf32> to vector<8x64xf32>
    %14 = arith.truncf %13 : vector<8x64xf32> to vector<8x64xbf16>
    %cst_11 = arith.constant dense<0.000000e+00> : vector<8x512xf32>
    %15 = tpu.matmul %14, %7, %cst_11 {dimension_numbers = #tpu.dot_dimension_numbers<[1], [0], [0], [1], [0, 0, 1, 1], [], []>} : vector<8x64xbf16>, vector<64x512xbf16>, vector<8x512xf32> -> vector<8x512xf32>
    %16 = arith.addf %12, %15 : vector<8x512xf32>
    %17 = vector.extract_strided_slice %16 {offsets = [0, 0], sizes = [8, 128], strides = [1, 1]} : vector<8x512xf32> to vector<8x128xf32>
    %18 = arith.negf %17 : vector<8x128xf32>
    %19 = math.exp %18 : vector<8x128xf32>
    %cst_12 = arith.constant 1.000000e+00 : f32
    %20 = vector.broadcast %cst_12 : f32 to vector<8x128xf32>
    %21 = arith.addf %20, %19 : vector<8x128xf32>
    %22 = arith.divf %20, %21 : vector<8x128xf32>
    %23 = vector.extract_strided_slice %16 {offsets = [0, 128], sizes = [8, 128], strides = [1, 1]} : vector<8x512xf32> to vector<8x128xf32>
    %24 = arith.negf %23 : vector<8x128xf32>
    %25 = math.exp %24 : vector<8x128xf32>
    %cst_13 = arith.constant 1.000000e+00 : f32
    %26 = vector.broadcast %cst_13 : f32 to vector<8x128xf32>
    %27 = arith.addf %26, %25 : vector<8x128xf32>
    %28 = arith.divf %26, %27 : vector<8x128xf32>
    %29 = vector.extract_strided_slice %16 {offsets = [0, 256], sizes = [8, 128], strides = [1, 1]} : vector<8x512xf32> to vector<8x128xf32>
    %30 = math.tanh %29 : vector<8x128xf32>
    %31 = vector.extract_strided_slice %16 {offsets = [0, 384], sizes = [8, 128], strides = [1, 1]} : vector<8x512xf32> to vector<8x128xf32>
    %32 = arith.negf %31 : vector<8x128xf32>
    %33 = math.exp %32 : vector<8x128xf32>
    %cst_14 = arith.constant 1.000000e+00 : f32
    %34 = vector.broadcast %cst_14 : f32 to vector<8x128xf32>
    %35 = arith.addf %34, %33 : vector<8x128xf32>
    %36 = arith.divf %34, %35 : vector<8x128xf32>
    %37 = arith.mulf %28, %8 : vector<8x128xf32>
    %38 = arith.mulf %22, %30 : vector<8x128xf32>
    %39 = arith.addf %37, %38 : vector<8x128xf32>
    %40 = math.tanh %39 : vector<8x128xf32>
    %41 = arith.mulf %36, %40 : vector<8x128xf32>
    %42 = arith.index_cast %10 : i32 to index
    %c0_15 = arith.constant 0 : index
    %43 = vector.load %arg9[%42, %c0_15] : memref<64x128xf32, #tpu.memory_space<vmem>>, vector<8x128xf32>
    tpu.vector_store %arg9[%42, %c0_15], %41 {strides = array<i32>} : memref<64x128xf32, #tpu.memory_space<vmem>>, vector<8x128xf32>,
    %c1_i32 = arith.constant 1 : i32
    %c8_i32_16 = arith.constant 8 : i32
    %44 = arith.muli %c1_i32, %c8_i32_16 : i32
    %45 = tpu.assume_multiple %44, 8 : i32
    %46 = arith.index_cast %45 : i32 to index
    %c0_17 = arith.constant 0 : index
    %47 = vector.load %arg8[%46, %c0_17] : memref<64x512xf32, #tpu.memory_space<vmem>>, vector<8x512xf32>
    %48 = vector.extract_strided_slice %41 {offsets = [0, 0], sizes = [8, 64], strides = [1, 1]} : vector<8x128xf32> to vector<8x64xf32>
    %49 = arith.truncf %48 : vector<8x64xf32> to vector<8x64xbf16>
    %cst_18 = arith.constant dense<0.000000e+00> : vector<8x512xf32>
    %50 = tpu.matmul %49, %7, %cst_18 {dimension_numbers = #tpu.dot_dimension_numbers<[1], [0], [0], [1], [0, 0, 1, 1], [], []>} : vector<8x64xbf16>, vector<64x512xbf16>, vector<8x512xf32> -> vector<8x512xf32>
    %51 = arith.addf %47, %50 : vector<8x512xf32>
    %52 = vector.extract_strided_slice %51 {offsets = [0, 0], sizes = [8, 128], strides = [1, 1]} : vector<8x512xf32> to vector<8x128xf32>
    %53 = arith.negf %52 : vector<8x128xf32>
    %54 = math.exp %53 : vector<8x128xf32>
    %cst_19 = arith.constant 1.000000e+00 : f32
    %55 = vector.broadcast %cst_19 : f32 to vector<8x128xf32>
    %56 = arith.addf %55, %54 : vector<8x128xf32>
    %57 = arith.divf %55, %56 : vector<8x128xf32>
    %58 = vector.extract_strided_slice %51 {offsets = [0, 128], sizes = [8, 128], strides = [1, 1]} : vector<8x512xf32> to vector<8x128xf32>
    %59 = arith.negf %58 : vector<8x128xf32>
    %60 = math.exp %59 : vector<8x128xf32>
    %cst_20 = arith.constant 1.000000e+00 : f32
    %61 = vector.broadcast %cst_20 : f32 to vector<8x128xf32>
    %62 = arith.addf %61, %60 : vector<8x128xf32>
    %63 = arith.divf %61, %62 : vector<8x128xf32>
    %64 = vector.extract_strided_slice %51 {offsets = [0, 256], sizes = [8, 128], strides = [1, 1]} : vector<8x512xf32> to vector<8x128xf32>
    %65 = math.tanh %64 : vector<8x128xf32>
    %66 = vector.extract_strided_slice %51 {offsets = [0, 384], sizes = [8, 128], strides = [1, 1]} : vector<8x512xf32> to vector<8x128xf32>
    %67 = arith.negf %66 : vector<8x128xf32>
    %68 = math.exp %67 : vector<8x128xf32>
    %cst_21 = arith.constant 1.000000e+00 : f32
    %69 = vector.broadcast %cst_21 : f32 to vector<8x128xf32>
    %70 = arith.addf %69, %68 : vector<8x128xf32>
    %71 = arith.divf %69, %70 : vector<8x128xf32>
    %72 = arith.mulf %63, %39 : vector<8x128xf32>
    %73 = arith.mulf %57, %65 : vector<8x128xf32>
    %74 = arith.addf %72, %73 : vector<8x128xf32>
    %75 = math.tanh %74 : vector<8x128xf32>
    %76 = arith.mulf %71, %75 : vector<8x128xf32>
    %77 = arith.index_cast %45 : i32 to index
    %c0_22 = arith.constant 0 : index
    %78 = vector.load %arg9[%77, %c0_22] : memref<64x128xf32, #tpu.memory_space<vmem>>, vector<8x128xf32>
    tpu.vector_store %arg9[%77, %c0_22], %76 {strides = array<i32>} : memref<64x128xf32, #tpu.memory_space<vmem>>, vector<8x128xf32>,
    %c2_i32 = arith.constant 2 : i32
    %c8_i32_23 = arith.constant 8 : i32
    %79 = arith.muli %c2_i32, %c8_i32_23 : i32
    %80 = tpu.assume_multiple %79, 8 : i32
    %81 = arith.index_cast %80 : i32 to index
    %c0_24 = arith.constant 0 : index
    %82 = vector.load %arg8[%81, %c0_24] : memref<64x512xf32, #tpu.memory_space<vmem>>, vector<8x512xf32>
    %83 = vector.extract_strided_slice %76 {offsets = [0, 0], sizes = [8, 64], strides = [1, 1]} : vector<8x128xf32> to vector<8x64xf32>
    %84 = arith.truncf %83 : vector<8x64xf32> to vector<8x64xbf16>
    %cst_25 = arith.constant dense<0.000000e+00> : vector<8x512xf32>
    %85 = tpu.matmul %84, %7, %cst_25 {dimension_numbers = #tpu.dot_dimension_numbers<[1], [0], [0], [1], [0, 0, 1, 1], [], []>} : vector<8x64xbf16>, vector<64x512xbf16>, vector<8x512xf32> -> vector<8x512xf32>
    %86 = arith.addf %82, %85 : vector<8x512xf32>
    %87 = vector.extract_strided_slice %86 {offsets = [0, 0], sizes = [8, 128], strides = [1, 1]} : vector<8x512xf32> to vector<8x128xf32>
    %88 = arith.negf %87 : vector<8x128xf32>
    %89 = math.exp %88 : vector<8x128xf32>
    %cst_26 = arith.constant 1.000000e+00 : f32
    %90 = vector.broadcast %cst_26 : f32 to vector<8x128xf32>
    %91 = arith.addf %90, %89 : vector<8x128xf32>
    %92 = arith.divf %90, %91 : vector<8x128xf32>
    %93 = vector.extract_strided_slice %86 {offsets = [0, 128], sizes = [8, 128], strides = [1, 1]} : vector<8x512xf32> to vector<8x128xf32>
    %94 = arith.negf %93 : vector<8x128xf32>
    %95 = math.exp %94 : vector<8x128xf32>
    %cst_27 = arith.constant 1.000000e+00 : f32
    %96 = vector.broadcast %cst_27 : f32 to vector<8x128xf32>
    %97 = arith.addf %96, %95 : vector<8x128xf32>
    %98 = arith.divf %96, %97 : vector<8x128xf32>
    %99 = vector.extract_strided_slice %86 {offsets = [0, 256], sizes = [8, 128], strides = [1, 1]} : vector<8x512xf32> to vector<8x128xf32>
    %100 = math.tanh %99 : vector<8x128xf32>
    %101 = vector.extract_strided_slice %86 {offsets = [0, 384], sizes = [8, 128], strides = [1, 1]} : vector<8x512xf32> to vector<8x128xf32>
    %102 = arith.negf %101 : vector<8x128xf32>
    %103 = math.exp %102 : vector<8x128xf32>
    %cst_28 = arith.constant 1.000000e+00 : f32
    %104 = vector.broadcast %cst_28 : f32 to vector<8x128xf32>
    %105 = arith.addf %104, %103 : vector<8x128xf32>
    %106 = arith.divf %104, %105 : vector<8x128xf32>
    %107 = arith.mulf %98, %74 : vector<8x128xf32>
    %108 = arith.mulf %92, %100 : vector<8x128xf32>
    %109 = arith.addf %107, %108 : vector<8x128xf32>
    %110 = math.tanh %109 : vector<8x128xf32>
    %111 = arith.mulf %106, %110 : vector<8x128xf32>
    %112 = arith.index_cast %80 : i32 to index
    %c0_29 = arith.constant 0 : index
    %113 = vector.load %arg9[%112, %c0_29] : memref<64x128xf32, #tpu.memory_space<vmem>>, vector<8x128xf32>
    tpu.vector_store %arg9[%112, %c0_29], %111 {strides = array<i32>} : memref<64x128xf32, #tpu.memory_space<vmem>>, vector<8x128xf32>,
    %c3_i32 = arith.constant 3 : i32
    %c8_i32_30 = arith.constant 8 : i32
    %114 = arith.muli %c3_i32, %c8_i32_30 : i32
    %115 = tpu.assume_multiple %114, 8 : i32
    %116 = arith.index_cast %115 : i32 to index
    %c0_31 = arith.constant 0 : index
    %117 = vector.load %arg8[%116, %c0_31] : memref<64x512xf32, #tpu.memory_space<vmem>>, vector<8x512xf32>
    %118 = vector.extract_strided_slice %111 {offsets = [0, 0], sizes = [8, 64], strides = [1, 1]} : vector<8x128xf32> to vector<8x64xf32>
    %119 = arith.truncf %118 : vector<8x64xf32> to vector<8x64xbf16>
    %cst_32 = arith.constant dense<0.000000e+00> : vector<8x512xf32>
    %120 = tpu.matmul %119, %7, %cst_32 {dimension_numbers = #tpu.dot_dimension_numbers<[1], [0], [0], [1], [0, 0, 1, 1], [], []>} : vector<8x64xbf16>, vector<64x512xbf16>, vector<8x512xf32> -> vector<8x512xf32>
    %121 = arith.addf %117, %120 : vector<8x512xf32>
    %122 = vector.extract_strided_slice %121 {offsets = [0, 0], sizes = [8, 128], strides = [1, 1]} : vector<8x512xf32> to vector<8x128xf32>
    %123 = arith.negf %122 : vector<8x128xf32>
    %124 = math.exp %123 : vector<8x128xf32>
    %cst_33 = arith.constant 1.000000e+00 : f32
    %125 = vector.broadcast %cst_33 : f32 to vector<8x128xf32>
    %126 = arith.addf %125, %124 : vector<8x128xf32>
    %127 = arith.divf %125, %126 : vector<8x128xf32>
    %128 = vector.extract_strided_slice %121 {offsets = [0, 128], sizes = [8, 128], strides = [1, 1]} : vector<8x512xf32> to vector<8x128xf32>
    %129 = arith.negf %128 : vector<8x128xf32>
    %130 = math.exp %129 : vector<8x128xf32>
    %cst_34 = arith.constant 1.000000e+00 : f32
    %131 = vector.broadcast %cst_34 : f32 to vector<8x128xf32>
    %132 = arith.addf %131, %130 : vector<8x128xf32>
    %133 = arith.divf %131, %132 : vector<8x128xf32>
    %134 = vector.extract_strided_slice %121 {offsets = [0, 256], sizes = [8, 128], strides = [1, 1]} : vector<8x512xf32> to vector<8x128xf32>
    %135 = math.tanh %134 : vector<8x128xf32>
    %136 = vector.extract_strided_slice %121 {offsets = [0, 384], sizes = [8, 128], strides = [1, 1]} : vector<8x512xf32> to vector<8x128xf32>
    %137 = arith.negf %136 : vector<8x128xf32>
    %138 = math.exp %137 : vector<8x128xf32>
    %cst_35 = arith.constant 1.000000e+00 : f32
    %139 = vector.broadcast %cst_35 : f32 to vector<8x128xf32>
    %140 = arith.addf %139, %138 : vector<8x128xf32>
    %141 = arith.divf %139, %140 : vector<8x128xf32>
    %142 = arith.mulf %133, %109 : vector<8x128xf32>
    %143 = arith.mulf %127, %135 : vector<8x128xf32>
    %144 = arith.addf %142, %143 : vector<8x128xf32>
    %145 = math.tanh %144 : vector<8x128xf32>
    %146 = arith.mulf %141, %145 : vector<8x128xf32>
    %147 = arith.index_cast %115 : i32 to index
    %c0_36 = arith.constant 0 : index
    %148 = vector.load %arg9[%147, %c0_36] : memref<64x128xf32, #tpu.memory_space<vmem>>, vector<8x128xf32>
    tpu.vector_store %arg9[%147, %c0_36], %146 {strides = array<i32>} : memref<64x128xf32, #tpu.memory_space<vmem>>, vector<8x128xf32>,
    %c4_i32 = arith.constant 4 : i32
    %c8_i32_37 = arith.constant 8 : i32
    %149 = arith.muli %c4_i32, %c8_i32_37 : i32
    %150 = tpu.assume_multiple %149, 8 : i32
    %151 = arith.index_cast %150 : i32 to index
    %c0_38 = arith.constant 0 : index
    %152 = vector.load %arg8[%151, %c0_38] : memref<64x512xf32, #tpu.memory_space<vmem>>, vector<8x512xf32>
    %153 = vector.extract_strided_slice %146 {offsets = [0, 0], sizes = [8, 64], strides = [1, 1]} : vector<8x128xf32> to vector<8x64xf32>
    %154 = arith.truncf %153 : vector<8x64xf32> to vector<8x64xbf16>
    %cst_39 = arith.constant dense<0.000000e+00> : vector<8x512xf32>
    %155 = tpu.matmul %154, %7, %cst_39 {dimension_numbers = #tpu.dot_dimension_numbers<[1], [0], [0], [1], [0, 0, 1, 1], [], []>} : vector<8x64xbf16>, vector<64x512xbf16>, vector<8x512xf32> -> vector<8x512xf32>
    %156 = arith.addf %152, %155 : vector<8x512xf32>
    %157 = vector.extract_strided_slice %156 {offsets = [0, 0], sizes = [8, 128], strides = [1, 1]} : vector<8x512xf32> to vector<8x128xf32>
    %158 = arith.negf %157 : vector<8x128xf32>
    %159 = math.exp %158 : vector<8x128xf32>
    %cst_40 = arith.constant 1.000000e+00 : f32
    %160 = vector.broadcast %cst_40 : f32 to vector<8x128xf32>
    %161 = arith.addf %160, %159 : vector<8x128xf32>
    %162 = arith.divf %160, %161 : vector<8x128xf32>
    %163 = vector.extract_strided_slice %156 {offsets = [0, 128], sizes = [8, 128], strides = [1, 1]} : vector<8x512xf32> to vector<8x128xf32>
    %164 = arith.negf %163 : vector<8x128xf32>
    %165 = math.exp %164 : vector<8x128xf32>
    %cst_41 = arith.constant 1.000000e+00 : f32
    %166 = vector.broadcast %cst_41 : f32 to vector<8x128xf32>
    %167 = arith.addf %166, %165 : vector<8x128xf32>
    %168 = arith.divf %166, %167 : vector<8x128xf32>
    %169 = vector.extract_strided_slice %156 {offsets = [0, 256], sizes = [8, 128], strides = [1, 1]} : vector<8x512xf32> to vector<8x128xf32>
    %170 = math.tanh %169 : vector<8x128xf32>
    %171 = vector.extract_strided_slice %156 {offsets = [0, 384], sizes = [8, 128], strides = [1, 1]} : vector<8x512xf32> to vector<8x128xf32>
    %172 = arith.negf %171 : vector<8x128xf32>
    %173 = math.exp %172 : vector<8x128xf32>
    %cst_42 = arith.constant 1.000000e+00 : f32
    %174 = vector.broadcast %cst_42 : f32 to vector<8x128xf32>
    %175 = arith.addf %174, %173 : vector<8x128xf32>
    %176 = arith.divf %174, %175 : vector<8x128xf32>
    %177 = arith.mulf %168, %144 : vector<8x128xf32>
    %178 = arith.mulf %162, %170 : vector<8x128xf32>
    %179 = arith.addf %177, %178 : vector<8x128xf32>
    %180 = math.tanh %179 : vector<8x128xf32>
    %181 = arith.mulf %176, %180 : vector<8x128xf32>
    %182 = arith.index_cast %150 : i32 to index
    %c0_43 = arith.constant 0 : index
    %183 = vector.load %arg9[%182, %c0_43] : memref<64x128xf32, #tpu.memory_space<vmem>>, vector<8x128xf32>
    tpu.vector_store %arg9[%182, %c0_43], %181 {strides = array<i32>} : memref<64x128xf32, #tpu.memory_space<vmem>>, vector<8x128xf32>,
    %c5_i32 = arith.constant 5 : i32
    %c8_i32_44 = arith.constant 8 : i32
    %184 = arith.muli %c5_i32, %c8_i32_44 : i32
    %185 = tpu.assume_multiple %184, 8 : i32
    %186 = arith.index_cast %185 : i32 to index
    %c0_45 = arith.constant 0 : index
    %187 = vector.load %arg8[%186, %c0_45] : memref<64x512xf32, #tpu.memory_space<vmem>>, vector<8x512xf32>
    %188 = vector.extract_strided_slice %181 {offsets = [0, 0], sizes = [8, 64], strides = [1, 1]} : vector<8x128xf32> to vector<8x64xf32>
    %189 = arith.truncf %188 : vector<8x64xf32> to vector<8x64xbf16>
    %cst_46 = arith.constant dense<0.000000e+00> : vector<8x512xf32>
    %190 = tpu.matmul %189, %7, %cst_46 {dimension_numbers = #tpu.dot_dimension_numbers<[1], [0], [0], [1], [0, 0, 1, 1], [], []>} : vector<8x64xbf16>, vector<64x512xbf16>, vector<8x512xf32> -> vector<8x512xf32>
    %191 = arith.addf %187, %190 : vector<8x512xf32>
    %192 = vector.extract_strided_slice %191 {offsets = [0, 0], sizes = [8, 128], strides = [1, 1]} : vector<8x512xf32> to vector<8x128xf32>
    %193 = arith.negf %192 : vector<8x128xf32>
    %194 = math.exp %193 : vector<8x128xf32>
    %cst_47 = arith.constant 1.000000e+00 : f32
    %195 = vector.broadcast %cst_47 : f32 to vector<8x128xf32>
    %196 = arith.addf %195, %194 : vector<8x128xf32>
    %197 = arith.divf %195, %196 : vector<8x128xf32>
    %198 = vector.extract_strided_slice %191 {offsets = [0, 128], sizes = [8, 128], strides = [1, 1]} : vector<8x512xf32> to vector<8x128xf32>
    %199 = arith.negf %198 : vector<8x128xf32>
    %200 = math.exp %199 : vector<8x128xf32>
    %cst_48 = arith.constant 1.000000e+00 : f32
    %201 = vector.broadcast %cst_48 : f32 to vector<8x128xf32>
    %202 = arith.addf %201, %200 : vector<8x128xf32>
    %203 = arith.divf %201, %202 : vector<8x128xf32>
    %204 = vector.extract_strided_slice %191 {offsets = [0, 256], sizes = [8, 128], strides = [1, 1]} : vector<8x512xf32> to vector<8x128xf32>
    %205 = math.tanh %204 : vector<8x128xf32>
    %206 = vector.extract_strided_slice %191 {offsets = [0, 384], sizes = [8, 128], strides = [1, 1]} : vector<8x512xf32> to vector<8x128xf32>
    %207 = arith.negf %206 : vector<8x128xf32>
    %208 = math.exp %207 : vector<8x128xf32>
    %cst_49 = arith.constant 1.000000e+00 : f32
    %209 = vector.broadcast %cst_49 : f32 to vector<8x128xf32>
    %210 = arith.addf %209, %208 : vector<8x128xf32>
    %211 = arith.divf %209, %210 : vector<8x128xf32>
    %212 = arith.mulf %203, %179 : vector<8x128xf32>
    %213 = arith.mulf %197, %205 : vector<8x128xf32>
    %214 = arith.addf %212, %213 : vector<8x128xf32>
    %215 = math.tanh %214 : vector<8x128xf32>
    %216 = arith.mulf %211, %215 : vector<8x128xf32>
    %217 = arith.index_cast %185 : i32 to index
    %c0_50 = arith.constant 0 : index
    %218 = vector.load %arg9[%217, %c0_50] : memref<64x128xf32, #tpu.memory_space<vmem>>, vector<8x128xf32>
    tpu.vector_store %arg9[%217, %c0_50], %216 {strides = array<i32>} : memref<64x128xf32, #tpu.memory_space<vmem>>, vector<8x128xf32>,
    %c6_i32 = arith.constant 6 : i32
    %c8_i32_51 = arith.constant 8 : i32
    %219 = arith.muli %c6_i32, %c8_i32_51 : i32
    %220 = tpu.assume_multiple %219, 8 : i32
    %221 = arith.index_cast %220 : i32 to index
    %c0_52 = arith.constant 0 : index
    %222 = vector.load %arg8[%221, %c0_52] : memref<64x512xf32, #tpu.memory_space<vmem>>, vector<8x512xf32>
    %223 = vector.extract_strided_slice %216 {offsets = [0, 0], sizes = [8, 64], strides = [1, 1]} : vector<8x128xf32> to vector<8x64xf32>
    %224 = arith.truncf %223 : vector<8x64xf32> to vector<8x64xbf16>
    %cst_53 = arith.constant dense<0.000000e+00> : vector<8x512xf32>
    %225 = tpu.matmul %224, %7, %cst_53 {dimension_numbers = #tpu.dot_dimension_numbers<[1], [0], [0], [1], [0, 0, 1, 1], [], []>} : vector<8x64xbf16>, vector<64x512xbf16>, vector<8x512xf32> -> vector<8x512xf32>
    %226 = arith.addf %222, %225 : vector<8x512xf32>
    %227 = vector.extract_strided_slice %226 {offsets = [0, 0], sizes = [8, 128], strides = [1, 1]} : vector<8x512xf32> to vector<8x128xf32>
    %228 = arith.negf %227 : vector<8x128xf32>
    %229 = math.exp %228 : vector<8x128xf32>
    %cst_54 = arith.constant 1.000000e+00 : f32
    %230 = vector.broadcast %cst_54 : f32 to vector<8x128xf32>
    %231 = arith.addf %230, %229 : vector<8x128xf32>
    %232 = arith.divf %230, %231 : vector<8x128xf32>
    %233 = vector.extract_strided_slice %226 {offsets = [0, 128], sizes = [8, 128], strides = [1, 1]} : vector<8x512xf32> to vector<8x128xf32>
    %234 = arith.negf %233 : vector<8x128xf32>
    %235 = math.exp %234 : vector<8x128xf32>
    %cst_55 = arith.constant 1.000000e+00 : f32
    %236 = vector.broadcast %cst_55 : f32 to vector<8x128xf32>
    %237 = arith.addf %236, %235 : vector<8x128xf32>
    %238 = arith.divf %236, %237 : vector<8x128xf32>
    %239 = vector.extract_strided_slice %226 {offsets = [0, 256], sizes = [8, 128], strides = [1, 1]} : vector<8x512xf32> to vector<8x128xf32>
    %240 = math.tanh %239 : vector<8x128xf32>
    %241 = vector.extract_strided_slice %226 {offsets = [0, 384], sizes = [8, 128], strides = [1, 1]} : vector<8x512xf32> to vector<8x128xf32>
    %242 = arith.negf %241 : vector<8x128xf32>
    %243 = math.exp %242 : vector<8x128xf32>
    %cst_56 = arith.constant 1.000000e+00 : f32
    %244 = vector.broadcast %cst_56 : f32 to vector<8x128xf32>
    %245 = arith.addf %244, %243 : vector<8x128xf32>
    %246 = arith.divf %244, %245 : vector<8x128xf32>
    %247 = arith.mulf %238, %214 : vector<8x128xf32>
    %248 = arith.mulf %232, %240 : vector<8x128xf32>
    %249 = arith.addf %247, %248 : vector<8x128xf32>
    %250 = math.tanh %249 : vector<8x128xf32>
    %251 = arith.mulf %246, %250 : vector<8x128xf32>
    %252 = arith.index_cast %220 : i32 to index
    %c0_57 = arith.constant 0 : index
    %253 = vector.load %arg9[%252, %c0_57] : memref<64x128xf32, #tpu.memory_space<vmem>>, vector<8x128xf32>
    tpu.vector_store %arg9[%252, %c0_57], %251 {strides = array<i32>} : memref<64x128xf32, #tpu.memory_space<vmem>>, vector<8x128xf32>,
    %c7_i32 = arith.constant 7 : i32
    %c8_i32_58 = arith.constant 8 : i32
    %254 = arith.muli %c7_i32, %c8_i32_58 : i32
    %255 = tpu.assume_multiple %254, 8 : i32
    %256 = arith.index_cast %255 : i32 to index
    %c0_59 = arith.constant 0 : index
    %257 = vector.load %arg8[%256, %c0_59] : memref<64x512xf32, #tpu.memory_space<vmem>>, vector<8x512xf32>
    %258 = vector.extract_strided_slice %251 {offsets = [0, 0], sizes = [8, 64], strides = [1, 1]} : vector<8x128xf32> to vector<8x64xf32>
    %259 = arith.truncf %258 : vector<8x64xf32> to vector<8x64xbf16>
    %cst_60 = arith.constant dense<0.000000e+00> : vector<8x512xf32>
    %260 = tpu.matmul %259, %7, %cst_60 {dimension_numbers = #tpu.dot_dimension_numbers<[1], [0], [0], [1], [0, 0, 1, 1], [], []>} : vector<8x64xbf16>, vector<64x512xbf16>, vector<8x512xf32> -> vector<8x512xf32>
    %261 = arith.addf %257, %260 : vector<8x512xf32>
    %262 = vector.extract_strided_slice %261 {offsets = [0, 0], sizes = [8, 128], strides = [1, 1]} : vector<8x512xf32> to vector<8x128xf32>
    %263 = arith.negf %262 : vector<8x128xf32>
    %264 = math.exp %263 : vector<8x128xf32>
    %cst_61 = arith.constant 1.000000e+00 : f32
    %265 = vector.broadcast %cst_61 : f32 to vector<8x128xf32>
    %266 = arith.addf %265, %264 : vector<8x128xf32>
    %267 = arith.divf %265, %266 : vector<8x128xf32>
    %268 = vector.extract_strided_slice %261 {offsets = [0, 128], sizes = [8, 128], strides = [1, 1]} : vector<8x512xf32> to vector<8x128xf32>
    %269 = arith.negf %268 : vector<8x128xf32>
    %270 = math.exp %269 : vector<8x128xf32>
    %cst_62 = arith.constant 1.000000e+00 : f32
    %271 = vector.broadcast %cst_62 : f32 to vector<8x128xf32>
    %272 = arith.addf %271, %270 : vector<8x128xf32>
    %273 = arith.divf %271, %272 : vector<8x128xf32>
    %274 = vector.extract_strided_slice %261 {offsets = [0, 256], sizes = [8, 128], strides = [1, 1]} : vector<8x512xf32> to vector<8x128xf32>
    %275 = math.tanh %274 : vector<8x128xf32>
    %276 = vector.extract_strided_slice %261 {offsets = [0, 384], sizes = [8, 128], strides = [1, 1]} : vector<8x512xf32> to vector<8x128xf32>
    %277 = arith.negf %276 : vector<8x128xf32>
    %278 = math.exp %277 : vector<8x128xf32>
    %cst_63 = arith.constant 1.000000e+00 : f32
    %279 = vector.broadcast %cst_63 : f32 to vector<8x128xf32>
    %280 = arith.addf %279, %278 : vector<8x128xf32>
    %281 = arith.divf %279, %280 : vector<8x128xf32>
    %282 = arith.mulf %273, %249 : vector<8x128xf32>
    %283 = arith.mulf %267, %275 : vector<8x128xf32>
    %284 = arith.addf %282, %283 : vector<8x128xf32>
    %285 = math.tanh %284 : vector<8x128xf32>
    %286 = arith.mulf %281, %285 : vector<8x128xf32>
    %287 = arith.index_cast %255 : i32 to index
    %c0_64 = arith.constant 0 : index
    %288 = vector.load %arg9[%287, %c0_64] : memref<64x128xf32, #tpu.memory_space<vmem>>, vector<8x128xf32>
    tpu.vector_store %arg9[%287, %c0_64], %286 {strides = array<i32>} : memref<64x128xf32, #tpu.memory_space<vmem>>, vector<8x128xf32>,
    %c8_i32_65 = arith.constant 8 : i32
    %c0_66 = arith.constant 0 : index
    %c0_67 = arith.constant 0 : index
    %289 = vector.load %arg9[%c0_66, %c0_67] : memref<64x128xf32, #tpu.memory_space<vmem>>, vector<64x128xf32>
    %290 = arith.truncf %289 : vector<64x128xf32> to vector<64x128xbf16>
    %c0_68 = arith.constant 0 : index
    %c0_69 = arith.constant 0 : index
    %291 = vector.load %arg5[%c0_68, %c0_69] : memref<128x128xbf16, #tpu.memory_space<vmem>>, vector<128x128xbf16>
    %cst_70 = arith.constant dense<0.000000e+00> : vector<64x128xf32>
    %292 = tpu.matmul %290, %291, %cst_70 {dimension_numbers = #tpu.dot_dimension_numbers<[1], [0], [0], [1], [0, 0, 1, 1], [], []>} : vector<64x128xbf16>, vector<128x128xbf16>, vector<64x128xf32> -> vector<64x128xf32>
    %c0_71 = arith.constant 0 : index
    %c0_72 = arith.constant 0 : index
    %293 = vector.load %arg6[%c0_71, %c0_72] : memref<1x128xf32, #tpu.memory_space<vmem>>, vector<1x128xf32>
    %294 = vector.broadcast %293 : vector<1x128xf32> to vector<64x128xf32>
    %295 = arith.addf %292, %294 : vector<64x128xf32>
    %c0_73 = arith.constant 0 : index
    %c0_74 = arith.constant 0 : index
    %296 = vector.load %arg7[%c0_73, %c0_74] : memref<64x128xf32, #tpu.memory_space<vmem>>, vector<64x128xf32>
    tpu.vector_store %arg7[%c0_73, %c0_74], %295 {strides = array<i32>} : memref<64x128xf32, #tpu.memory_space<vmem>>, vector<64x128xf32>,
    return
  }
  func.func @transform_0(%arg0: i32) -> (i32, i32) {
    %c0_i32 = arith.constant 0 : i32
    %c0_i32_0 = arith.constant 0 : i32
    %c0_i32_1 = arith.constant 0 : i32
    return %c0_i32, %c0_i32_0 : i32, i32
  }
  func.func @transform_1(%arg0: i32) -> (i32, i32) {
    %c0_i32 = arith.constant 0 : i32
    %c0_i32_0 = arith.constant 0 : i32
    %c0_i32_1 = arith.constant 0 : i32
    return %c0_i32, %c0_i32_0 : i32, i32
  }
  func.func @transform_2(%arg0: i32) -> (i32, i32) {
    %c0_i32 = arith.constant 0 : i32
    %c0_i32_0 = arith.constant 0 : i32
    %c0_i32_1 = arith.constant 0 : i32
    return %c0_i32, %c0_i32_0 : i32, i32
  }
  func.func @transform_3(%arg0: i32) -> (i32, i32) {
    %c0_i32 = arith.constant 0 : i32
    %c0_i32_0 = arith.constant 0 : i32
    %c0_i32_1 = arith.constant 0 : i32
    return %c0_i32, %c0_i32_0 : i32, i32
  }
  func.func @transform_4(%arg0: i32) -> (i32, i32) {
    %c0_i32 = arith.constant 0 : i32
    %c0_i32_0 = arith.constant 0 : i32
    %c0_i32_1 = arith.constant 0 : i32
    return %c0_i32, %c0_i32_0 : i32, i32
  }
  func.func @transform_5(%arg0: i32) -> (i32, i32) {
    %c0_i32 = arith.constant 0 : i32
    %c0_i32_0 = arith.constant 0 : i32
    %c0_i32_1 = arith.constant 0 : i32
    return %c0_i32, %c0_i32_0 : i32, i32
  }
  func.func @transform_6(%arg0: i32) -> (i32, i32) {
    %c0_i32 = arith.constant 0 : i32
    %c0_i32_0 = arith.constant 0 : i32
    %c0_i32_1 = arith.constant 0 : i32
    return %c0_i32, %c0_i32_0 : i32, i32
  }
}

</mosaic_0001>

<bundles_post_ra>
// kernel: tpu_custom_call.1
= control target key start
LH: loop header
LB: loop body
LE: loop exit
PB: predicated region body
PF: predicated region fallthrough
CT: control target
= control target key end

     0   :  { %11 = vsyncpa [#allocation5], 0  ;;  %s2589_s0 = inlined_call_operand.vmem [shape: bf16[64,32], index: 0, kind: input, shape index: {}]   ;;  %s2590_s1 = inlined_call_operand.hbm [shape: bf16[32,512], index: 1, kind: input, shape index: {}]   ;;  %s2591_s2 = inlined_call_operand.hbm [shape: bf16[64,512], index: 2, kind: input, shape index: {}]   ;;  %s2592_s3 = inlined_call_operand.vmem [shape: f32[1,512], index: 3, kind: input, shape index: {}]   ;;  %s2593_s4 = inlined_call_operand.hbm [shape: bf16[128,128], index: 4, kind: input, shape index: {}]   ;;  %s2594_s5 = inlined_call_operand.vmem [shape: f32[1,128], index: 5, kind: input, shape index: {}]   ;;  %s2595_s6 = inlined_call_operand.hbm [shape: f32[64,128], index: 6, kind: output, shape index: {}]  }
   0x1   :  { %12 = vsyncpa [#allocation8], 0 }
   0x2   :  { %13 = vsyncpa [#allocation6], 0  ;;  %s33_s23 = sshll.u32 %s2591_s2, 4  ;;  %s2108_s24 = smov [#allocation7]   ;;  %s34_s23 = int_to_ptr.hbm [resolvable:$true] %s33_s23 }
   0x3   :  { %s35_s25 = sshll.u32 %s2108_s24, 4  ;;  %s20_s28 = sshll.u32 %s2590_s1, 4  ;;  %s36_s25 = int_to_ptr.vmem [resolvable:$true] %s35_s25  ;;  %s21_s28 = int_to_ptr.hbm [resolvable:$true] %s20_s28 }
   0x4   :  { %s2109_s29 = smov 256   ;;  %s2110_s30 = smov 16  }
   0x5   :  { %41 = dma.hbm_to_vmem [thread:$0]  %s34_s23, 2048, %s36_s25, [#allocation8], %s2109_s29, %s2109_s29, %s2110_s30  }
   0x6   :  { %s2111_s7 = smov [#allocation4]   ;;  %s48_s11 = sshll.u32 %s2593_s4, 4  ;;  %s49_s11 = int_to_ptr.hbm [resolvable:$true] %s48_s11 }
   0x7   :  { %s22_s8 = sshll.u32 %s2111_s7, 4  ;;  %s2112_s2 = smov [#allocation9]   ;;  %s23_s8 = int_to_ptr.vmem [resolvable:$true] %s22_s8 }
   0x8   :  { %28 = dma.hbm_to_vmem [thread:$0]  %s21_s28, 1024, %s23_s8, [#allocation5], %s2109_s29, %s2109_s29, %s2110_s30  }
   0x9   :  { %s50_s12 = sshll.u32 %s2112_s2, 4  ;;  %s2113_s13 = smov 64   ;;  %s51_s12 = int_to_ptr.vmem [resolvable:$true] %s50_s12 }
   0xa   :  { %s2114_s14 = smov 4  }
   0xb   :  { %56 = dma.hbm_to_vmem [thread:$0]  %s49_s11, 1024, %s51_s12, [#allocation8], %s2113_s13, %s2113_s13, %s2114_s14  }
   0xc   :  { %2102 = dma.done.wait [#allocation5], 1024  }
   0xd   :  { %2103 = vsyncadd [#allocation5], 4294966272 }
   0xe   :  { %2104 = dma.done.wait [#allocation8], 3072  }
   0xf   :  { %2105 = vsyncadd [#allocation8], 4294964224  ;;  %v1648_v0 = vld [vmem:[#allocation4 + $0x20] sm:$0xf]  ;;  %v1836_v1 = vld [vmem:[#allocation4 + $0x2c] sm:$0xf0] }
  0x10   :  { %v1835_v2 = vld [vmem:[#allocation4 + $0x2c] sm:$0xf]  ;;  %v1649_v3 = vor.u32 %v1836_v1, %v1648_v0  ;;  %v1658_v4 = vld [vmem:[#allocation4 + $0x38] sm:$0xf0]  ;;  %v1632_v5 = vld [vmem:[#allocation4] sm:$0xf] }
  0x11   :  { %v1832_v6 = vld [vmem:[#allocation4 + $0xc] sm:$0xf0]  ;;  %v1661_v7 = vor.u32 %v1835_v2, %v1658_v4  ;;  %v1831_v8 = vld [vmem:[#allocation4 + $0xc] sm:$0xf]  ;;  %v1642_v9 = vld [vmem:[#allocation4 + $0x18] sm:$0xf0] }
  0x12   :  { %1862 = vmatpush.bf16.msra.mxu1 %v1649_v3  ;;  %1863 = vmatpush.bf16.msra.mxu2 %v1649_v3  ;;  %v1633_v10 = vor.u32 %v1832_v6, %v1632_v5  ;;  %v1656_v11 = vld [vmem:[#allocation4 + $0x28] sm:$0xf]  ;;  %v1837_v12 = vld [vmem:[#allocation4 + $0x34] sm:$0xf0]  ;;  %v1645_v13 = vor.u32 %v1831_v8, %v1642_v9  ;;  %v2171_v15 = vld [vmem:[%s2589_s0 + $0x10] sm:$0xff]  ;;  %vm158_vm0 = vcmask 261120  }
  0x13   :  { %264 = vmatpush.bf16.msra.mxu3 %v1661_v7  ;;  %v2166_v14 = vld [vmem:[%s2589_s0 + $0x8] sm:$0xff]  ;;  %v1657_v16 = vor.u32 %v1837_v12, %v1656_v11  ;;  %v1834_v17 = vld [vmem:[#allocation4 + $0x24] sm:$0xf]  ;;  %v1650_v18 = vld [vmem:[#allocation4 + $0x30] sm:$0xf0]  ;;  %177 = vmatpush.bf16.msra.mxu0 %v1649_v3  ;;  %v2115_v12 = vmov 0  }
  0x14   :  { %v2176_v19 = vld [vmem:[%s2589_s0] sm:$0xff]  ;;  %v1653_v20 = vor.u32 %v1834_v17, %v1650_v18  ;;  %v1852_v22 = vld [vmem:[#allocation7 + $0x6c] sm:$0xf0]  ;;  %v1634_v25 = vld [vmem:[#allocation4 + $0x10] sm:$0xf0]  ;;  %vm422_vm13 = vcmask 523264  }
  0x15   :  { %v1728_v21 = vld [vmem:[#allocation7 + $0x60] sm:$0xf]  ;;  %v1830_v24 = vld [vmem:[#allocation4 + $0x4] sm:$0xf]  ;;  %v1640_v26 = vld [vmem:[#allocation4 + $0x8] sm:$0xf] }
  0x16   :  { %v2178_v23 = vor.u32 %v1852_v22, %v1728_v21  ;;  %1864 = vmatpush.bf16.msra.mxu1 %v1633_v10  ;;  %1865 = vmatpush.bf16.msra.mxu2 %v1633_v10  ;;  %v1833_v27 = vld [vmem:[#allocation4 + $0x14] sm:$0xf0]  ;;  %v1850_v28 = vld [vmem:[#allocation7 + $0x64] sm:$0xf]  ;;  %v1730_v29 = vld [vmem:[#allocation7 + $0x70] sm:$0xf0]  ;;  %v1637_v33 = vor.u32 %v1830_v24, %v1634_v25 }
  0x17   :  { %265 = vmatpush.bf16.msra.mxu3 %v1645_v13  ;;  %v1641_v30 = vor.u32 %v1833_v27, %v1640_v26  ;;  %v1712_v31 = vld [vmem:[#allocation7 + $0x40] sm:$0xf]  ;;  %v1848_v32 = vld [vmem:[#allocation7 + $0x4c] sm:$0xf0]  ;;  %v2187_v35 = vor.u32 %v1850_v28, %v1730_v29  ;;  %v1736_v36 = vld [vmem:[#allocation7 + $0x68] sm:$0xf]  ;;  %178 = vmatpush.bf16.msra.mxu0 %v1633_v10 }
  0x18   :  { %v2181_v34 = vor.u32 %v1848_v32, %v1712_v31  ;;  %v1853_v37 = vld [vmem:[#allocation7 + $0x74] sm:$0xf0]  ;;  %v1846_v38 = vld [vmem:[#allocation7 + $0x44] sm:$0xf]  ;;  %v1714_v40 = vld [vmem:[#allocation7 + $0x50] sm:$0xf0] }
  0x19   :  { %1663 = vmatmul.msk.bf16.vlgmr.msra.gmra.mxu1 %vm158_vm0, %v2166_v14  ;;  %1664 = vmatmul.msk.bf16.vlgmr.msra.gmra.mxu2 %vm158_vm0, %v2171_v15  ;;  %v2191_v39 = vor.u32 %v1853_v37, %v1736_v36  ;;  %v1696_v41 = vld [vmem:[#allocation7 + $0x20] sm:$0xf]  ;;  %v1844_v42 = vld [vmem:[#allocation7 + $0x2c] sm:$0xf0]  ;;  %v2199_v44 = vor.u32 %v1846_v38, %v1714_v40  ;;  %v2210_v45 = vld [vmem:[%s2589_s0 + $0x18] sm:$0xff]  ;;  %s1593_s26 = sshll.u32 %s2595_s6, 4  ;;  %s1594_s26 = int_to_ptr.hbm [resolvable:$true] %s1593_s26 }
  0x1a   :  { %235 = vmatpush.bf16.msrb.mxu2 %v1657_v16  ;;  %206 = vmatpush.bf16.msrb.mxu1 %v1653_v20  ;;  %v2195_v43 = vor.u32 %v1844_v42, %v1696_v41  ;;  %v1720_v46 = vld [vmem:[#allocation7 + $0x48] sm:$0xf]  ;;  %v1849_v47 = vld [vmem:[#allocation7 + $0x54] sm:$0xf0]  ;;  %v1842_v48 = vld [vmem:[#allocation7 + $0x24] sm:$0xf] }
  0x1b   :  { %430 = vmatpush.bf16.msrb.mxu3 %v2178_v23  ;;  %561 = vmatpush.bf16.msrb.mxu0 %v2178_v23  ;;  %v2218_v49 = vor.u32 %v1849_v47, %v1720_v46  ;;  %v1698_v50 = vld [vmem:[#allocation7 + $0x30] sm:$0xf0]  ;;  %v1680_v51 = vld [vmem:[#allocation7] sm:$0xf]  ;;  %v1840_v52 = vld [vmem:[#allocation7 + $0xc] sm:$0xf0] }
  0x1c   :  { %1674 = vmatmul.msk.bf16.vlgmr.msra.gmra.mxu3 %vm158_vm0, %v2176_v19  ;;  %1662 = vmatmul.msk.bf16.vlgmr.msra.gmra.mxu0 %vm158_vm0, %v2176_v19  ;;  %v2220_v53 = vor.u32 %v1842_v48, %v1698_v50  ;;  %v2222_v54 = vor.u32 %v1840_v52, %v1680_v51  ;;  %v1851_v55 = vld [vmem:[#allocation7 + $0x6c] sm:$0xf]  ;;  %v1738_v56 = vld [vmem:[#allocation7 + $0x78] sm:$0xf0]  ;;  %v1704_v58 = vld [vmem:[#allocation7 + $0x28] sm:$0xf] }
  0x1d   :  { %v2235_v57 = vor.u32 %v1851_v55, %v1738_v56  ;;  %v1845_v59 = vld [vmem:[#allocation7 + $0x34] sm:$0xf0]  ;;  %v1838_v60 = vld [vmem:[#allocation7 + $0x4] sm:$0xf]  ;;  %v1682_v62 = vld [vmem:[#allocation7 + $0x10] sm:$0xf0] }
  0x1e   :  { %236 = vmatpush.bf16.msrb.mxu2 %v1641_v30  ;;  %207 = vmatpush.bf16.msrb.mxu1 %v1637_v33  ;;  %v2239_v61 = vor.u32 %v1845_v59, %v1704_v58  ;;  %v1847_v63 = vld [vmem:[#allocation7 + $0x4c] sm:$0xf]  ;;  %v1722_v0 = vld [vmem:[#allocation7 + $0x58] sm:$0xf0]  ;;  %v2242_v1 = vor.u32 %v1838_v60, %v1682_v62  ;;  %v1688_v9 = vld [vmem:[#allocation7 + $0x8] sm:$0xf] }
  0x1f   :  { %431 = vmatpush.bf16.msrb.mxu3 %v2181_v34  ;;  %562 = vmatpush.bf16.msrb.mxu0 %v2181_v34  ;;  %v2244_v2 = vor.u32 %v1847_v63, %v1722_v0  ;;  %v1843_v3 = vld [vmem:[#allocation7 + $0x2c] sm:$0xf]  ;;  %v1706_v4 = vld [vmem:[#allocation7 + $0x38] sm:$0xf0]  ;;  %v1841_v10 = vld [vmem:[#allocation7 + $0x14] sm:$0xf0] }
  0x20   :  { %v2250_v5 = vor.u32 %v1843_v3, %v1706_v4  ;;  %v1839_v6 = vld [vmem:[#allocation7 + $0xc] sm:$0xf]  ;;  %v1690_v7 = vld [vmem:[#allocation7 + $0x18] sm:$0xf0]  ;;  %v2265_v11 = vor.u32 %v1841_v10, %v1688_v9  ;;  %v88_v13 = vld [vmem:[%s2592_s3] sm:$0xf] }
  0x21   :  { %v2254_v8 = vor.u32 %v1839_v6, %v1690_v7  ;;  %v2312_v25 = vperm.slane %v88_v13, 3  ;;  %v91_v27 = vperm.slane %v88_v13, 1  ;;  %v92_v48 = vperm.slane %v88_v13, 2  ;;  %s2117_s27 = smov 128   ;;  %s2118_s28 = smov 8  }
  0x22   :  { %443 = vmatpush.bf16.msra.mxu1 %v2187_v35  ;;  %456 = vmatpush.bf16.msra.mxu2 %v2191_v39 }
  0x23   :  { %432 = vmatpush.bf16.msrb.mxu3 %v2195_v43  ;;  %563 = vmatpush.bf16.msrb.mxu0 %v2195_v43 }
  0x26   :  { %444 = vmatpush.bf16.msra.mxu1 %v2199_v44  ;;  %457 = vmatpush.bf16.msra.mxu2 %v2218_v49 }
  0x27   :  { %433 = vmatpush.bf16.msrb.mxu3 %v2222_v54  ;;  %564 = vmatpush.bf16.msrb.mxu0 %v2222_v54 }
  0x29   :  { %1665 = vmatmul.msk.bf16.gmra.mxu2 %vm158_vm0, %v2210_v45  ;;  %1666 = vmatmul.msk.bf16.vlgmr.msrb.gmra.mxu1 %vm158_vm0, %v2176_v19 }
  0x2a   :  { %445 = vmatpush.bf16.msra.mxu1 %v2220_v53  ;;  %458 = vmatpush.bf16.msra.mxu2 %v2239_v61 }
  0x2b   :  { %693 = vmatpush.bf16.msra.mxu0 %v2178_v23  ;;  %469 = vmatpush.bf16.msra.mxu3 %v2235_v57 }
  0x2c   :  { %1675 = vmatmul.msk.bf16.gmra.mxu3 %vm158_vm0, %v2166_v14 }
  0x2e   :  { %446 = vmatpush.bf16.msra.mxu1 %v2242_v1  ;;  %459 = vmatpush.bf16.msra.mxu2 %v2265_v11 }
  0x2f   :  { %694 = vmatpush.bf16.msra.mxu0 %v2181_v34  ;;  %470 = vmatpush.bf16.msra.mxu3 %v2244_v2 }
  0x32   :  { %574 = vmatpush.bf16.msrb.mxu1 %v2187_v35 }
  0x33   :  { %695 = vmatpush.bf16.msra.mxu0 %v2195_v43  ;;  %471 = vmatpush.bf16.msra.mxu3 %v2250_v5 }
  0x36   :  { %575 = vmatpush.bf16.msrb.mxu1 %v2199_v44 }
  0x37   :  { %696 = vmatpush.bf16.msra.mxu0 %v2222_v54  ;;  %472 = vmatpush.bf16.msra.mxu3 %v2254_v8 }
  0x39   :  { %1667 = vmatmul.msk.bf16.gmra.mxu1 %vm158_vm0, %v2166_v14  ;;  %1670 = vmatmul.msk.bf16.vlgmr.msrb.gmra.mxu2 %vm158_vm0, %v2176_v19 }
  0x3a   :  { %576 = vmatpush.bf16.msrb.mxu1 %v2220_v53  ;;  %587 = vmatpush.bf16.msrb.mxu2 %v2191_v39 }
  0x3c   :  { %1676 = vmatmul.msk.bf16.gmra.mxu3 %vm158_vm0, %v2171_v15 }
  0x3e   :  { %577 = vmatpush.bf16.msrb.mxu1 %v2242_v1  ;;  %588 = vmatpush.bf16.msrb.mxu2 %v2218_v49 }
  0x42   :  { %589 = vmatpush.bf16.msrb.mxu2 %v2239_v61 }
  0x46   :  { %590 = vmatpush.bf16.msrb.mxu2 %v2265_v11 }
  0x49   :  { %1668 = vmatmul.msk.bf16.gmra.mxu1 %vm158_vm0, %v2171_v15  ;;  %1671 = vmatmul.msk.bf16.gmra.mxu2 %vm158_vm0, %v2166_v14  ;;  %v2298_v14 = vperm.slane %v88_v13, 0 }
  0x4c   :  { %1677 = vmatmul.msk.bf16.gmra.mxu3 %vm158_vm0, %v2210_v45 }
  0x59   :  { %1669 = vmatmul.msk.bf16.gmra.mxu1 %vm158_vm0, %v2210_v45  ;;  %1672 = vmatmul.msk.bf16.gmra.mxu2 %vm158_vm0, %v2171_v15 }
  0x5c   :  { %434 = vmatmul.bf16.vlgmr.msrb.gmra.mxu3 %v2115_v12 }
  0x5d   :  { %600 = vmatpush.bf16.msrb.mxu3 %v2235_v57 }
  0x61   :  { %601 = vmatpush.bf16.msrb.mxu3 %v2244_v2 }
  0x65   :  { %602 = vmatpush.bf16.msrb.mxu3 %v2250_v5 }
  0x69   :  { %603 = vmatpush.bf16.msrb.mxu3 %v2254_v8  ;;  %1673 = vmatmul.msk.bf16.gmra.mxu2 %vm158_vm0, %v2210_v45 }
  0x6a   :  { %447 = vmatmul.bf16.vlgmr.msra.gmra.mxu1 %v2115_v12 }
  0x6b   :  { %706 = vmatpush.bf16.msra.mxu1 %v2187_v35 }
  0x6c   :  { %473 = vmatmul.bf16.vlgmr.msra.gmra.mxu3 %v2115_v12 }
  0x6d   :  { %732 = vmatpush.bf16.msra.mxu3 %v2235_v57 }
  0x6f   :  { %707 = vmatpush.bf16.msra.mxu1 %v2199_v44 }
  0x71   :  { %733 = vmatpush.bf16.msra.mxu3 %v2244_v2 }
  0x73   :  { %708 = vmatpush.bf16.msra.mxu1 %v2220_v53 }
  0x75   :  { %734 = vmatpush.bf16.msra.mxu3 %v2250_v5 }
  0x77   :  { %709 = vmatpush.bf16.msra.mxu1 %v2242_v1 }
  0x79   :  { %735 = vmatpush.bf16.msra.mxu3 %v2254_v8  ;;  %460 = vmatmul.bf16.vlgmr.msra.gmra.mxu2 %v2115_v12 }
  0x7a   :  { %719 = vmatpush.bf16.msra.mxu2 %v2191_v39 }
  0x7e   :  { %720 = vmatpush.bf16.msra.mxu2 %v2218_v49 }
  0x82   :  { %721 = vmatpush.bf16.msra.mxu2 %v2239_v61 }
  0x86   :  { %722 = vmatpush.bf16.msra.mxu2 %v2265_v11 }
  0x96   :  { %v185_v15 = vpop.f32.mrf.mxu1 }
  0x97   :  { %v2301_v16 = vadd.f32 %v185_v15, %v2298_v14 }
  0x99   :  { %v180_v13 = vpop.f32.mrf.mxu0 }
  0x9a   :  { %v181_v15 = vadd.f32 %v180_v13, %v2298_v14 }
  0x9c   :  { %v190_v17 = vpop.f32.mrf.mxu2 }
  0x9d   :  { %v2304_v18 = vadd.f32 %v190_v17, %v2298_v14 }
  0x9e   :  { %v2306_v20 = vpop.f32.mrf.mxu1 }
  0x9f   :  { %v267_v19 = vpop.f32.mrf.mxu3 }
  0xa4   :  { %v2308_v21 = vpop.f32.mrf.mxu2 }
  0xa6   :  { %v209_v24 = vpop.f32.mrf.mxu1 }
  0xa7   :  { %v2310_v22 = vpop.f32.mrf.mxu3 }
  0xac   :  { %v195_v26 = vpop.f32.mrf.mxu2 }
  0xad   :  { %v2315_v28 = vadd.f32 %v195_v26, %v2298_v14 }
  0xae   :  { %v211_v31 = vpop.f32.mrf.mxu1 }
  0xaf   :  { %v272_v29 = vpop.f32.mrf.mxu3  ;;  %v2320_v32 = vadd.f32 %v211_v31, %v91_v27 }
  0xb0   :  { %v2318_v30 = vadd.f32 %v272_v29, %v2312_v25 }
  0xb4   :  { %v2322_v33 = vpop.f32.mrf.mxu2 }
  0xb5   :  { %2596 = vst [vmem:[#allocation14_spill] sm:$0xff] %v2322_v33 }
  0xb6   :  { %v214_v38 = vpop.f32.mrf.mxu1 }
  0xb7   :  { %v274_v36 = vpop.f32.mrf.mxu3  ;;  %v2327_v40 = vadd.f32 %v214_v38, %v91_v27 }
  0xb8   :  { %v2325_v37 = vadd.f32 %v274_v36, %v2312_v25 }
  0xbc   :  { %v2329_v41 = vpop.f32.mrf.mxu2 }
  0xbe   :  { %v216_v46 = vpop.f32.mrf.mxu1 }
  0xbf   :  { %v277_v42 = vpop.f32.mrf.mxu3  ;;  %v2334_v47 = vadd.f32 %v216_v46, %v91_v27 }
  0xc0   :  { %v2332_v45 = vadd.f32 %v277_v42, %v2312_v25 }
  0xc4   :  { %v240_v50 = vpop.f32.mrf.mxu2 }
  0xc5   :  { %v2336_v51 = vadd.f32 %v240_v50, %v92_v48  ;;  %v210_v50 = vadd.f32 %v209_v24, %v91_v27 }
  0xc6   :  { %v219_v56 = vpop.f32.mrf.mxu1 }
  0xc7   :  { %v279_v52 = vpop.f32.mrf.mxu3  ;;  %v2341_v58 = vadd.f32 %v219_v56, %v91_v27 }
  0xc8   :  { %v2339_v55 = vadd.f32 %v279_v52, %v2312_v25 }
  0xcc   :  { %v243_v59 = vpop.f32.mrf.mxu2 }
  0xcd   :  { %v2343_v60 = vadd.f32 %v243_v59, %v92_v48 }
  0xce   :  { %v221_v0 = vpop.f32.mrf.mxu1 }
  0xcf   :  { %v282_v62 = vpop.f32.mrf.mxu3  ;;  %v2348_v3 = vadd.f32 %v221_v0, %v91_v27 }
  0xd0   :  { %v2346_v63 = vadd.f32 %v282_v62, %v2312_v25 }
  0xd2   :  { %2597 = vst [vmem:[#allocation15_spill] sm:$0xff] %v2346_v63 }
  0xd4   :  { %v245_v4 = vpop.f32.mrf.mxu2 }
  0xd5   :  { %v2350_v6 = vadd.f32 %v245_v4, %v92_v48 }
  0xd6   :  { %v224_v10 = vpop.f32.mrf.mxu1 }
  0xd7   :  { %v284_v7 = vpop.f32.mrf.mxu3  ;;  %v2355_v12 = vadd.f32 %v224_v10, %v91_v27  ;;  %v268_v10 = vadd.f32 %v267_v19, %v2312_v25 }
  0xd8   :  { %v2353_v9 = vadd.f32 %v284_v7, %v2312_v25 }
  0xd9   :  { %2599 = vst [vmem:[#allocation17_spill] sm:$0xff] %v2355_v12 }
  0xda   :  { %2598 = vst [vmem:[#allocation16_spill] sm:$0xff] %v2353_v9  ;;  %v239_v9 = vadd.f32 %v2329_v41, %v92_v48 }
  0xdc   :  { %v248_v17 = vpop.f32.mrf.mxu2 }
  0xdd   :  { %v2358_v26 = vadd.f32 %v248_v17, %v92_v48 }
  0xde   :  { %v226_v36 = vpop.f32.mrf.mxu1 }
  0xdf   :  { %v435_v29 = vpop.f32.mrf.mxu3  ;;  %v2360_v38 = vadd.f32 %v226_v36, %v91_v27 }
  0xe0   :  { %v478_v31 = vadd.f32 %v435_v29, %v181_v15 }
  0xe1   :  { %2600 = vst [vmem:[#allocation18_spill] sm:$0xff] %v2360_v38 }
  0xe2   :  { %v1742_v42 = vmul.f32 -1.442695, %v478_v31 }
  0xe4   :  { %1878 = vpow2.f32 %v1742_v42  ;;  %v250_v46 = vpop.f32.mrf.mxu2 }
  0xe5   :  { %v2362_v52 = vadd.f32 %v250_v46, %v92_v48 }
  0xe7   :  { %v437_v56 = vpop.f32.mrf.mxu3  ;;  %v448_v59 = vpop.f32.mrf.mxu1 }
  0xe8   :  { %v479_v62 = vadd.f32 %v448_v59, %v210_v50 }
  0xea   :  { %v1879_v0 = vpop.eup %1878  ;;  %v1743_v7 = vmul.f32 -1.442695, %v479_v62 }
  0xeb   :  { %v485_v4 = vadd.f32 1.0, %v1879_v0 }
  0xec   :  { %v253_v13 = vpop.f32.mrf.mxu2 }
  0xed   :  { %1880 = vrcp.f32 %v485_v4  ;;  %v2365_v15 = vadd.f32 %v253_v13, %v92_v48  ;;  %vm491_vm1 = vweird.f32 %v485_v4 }
  0xee   :  { %1882 = vpow2.f32 %v1743_v7 }
  0xef   :  { %2601 = vst [vmem:[#allocation19_spill] sm:$0xff] %v2365_v15  ;;  %v474_v17 = vpop.f32.mrf.mxu3  ;;  %v450_v31 = vpop.f32.mrf.mxu1 }
  0xf0   :  { %v481_v29 = vadd.f32 %v474_v17, %v268_v10 }
  0xf2   :  { %v1744_v36 = vmul.f32 -1.442695, %v481_v29 }
  0xf3   :  { %v1881_v24 = vpop.eup %1880 }
  0xf4   :  { %v1883_v27 = vpop.eup %1882  ;;  %v487_v42 = vmul.f32 %v1881_v24, %v485_v4  ;;  %1884 = vpow2.f32 %v1744_v36  ;;  %v255_v50 = vpop.f32.mrf.mxu2  ;;  %vm492_vm2 = vweird.f32 %v1881_v24 }
  0xf5   :  { %v504_v46 = vadd.f32 1.0, %v1883_v27  ;;  %v2367_v56 = vadd.f32 %v255_v50, %v92_v48  ;;  %v497_v27 = vand.u32 2147483648, %v485_v4  ;;  %vm493_vm4 = vmor %vm491_vm1, %vm492_vm2 }
  0xf6   :  { %v488_v62 = vsub.f32 1.0, %v487_v42 }
  0xf7   :  { %1886 = vrcp.f32 %v504_v46  ;;  %2602 = vst [vmem:[#allocation20_spill] sm:$0xff] %v2367_v56  ;;  %v476_v59 = vpop.f32.mrf.mxu3  ;;  %v516_v36 = vand.u32 2147483648, %v504_v46  ;;  %v514_v42 = vand.u32 2147483647, %v504_v46  ;;  %vm510_vm5 = vweird.f32 %v504_v46 }
  0xf8   :  { %v489_v7 = vmul.f32 %v1881_v24, %v488_v62  ;;  %v495_v59 = vand.u32 2147483647, %v485_v4  ;;  %v498_v33 = vor.u32 1.1754944e-38, %v497_v27 }
  0xf9   :  { %v517_v56 = vor.u32 1.1754944e-38, %v516_v36  ;;  %vm515_vm8 = vcmp.eq.f32.partialorder %v514_v42, 8.507059e+37 }
  0xfa   :  { %v1885_v19 = vpop.eup %1884  ;;  %v490_v38 = vadd.f32 %v1881_v24, %v489_v7  ;;  %vm496_vm7 = vcmp.eq.f32.partialorder %v495_v59, 8.507059e+37 }
  0xfb   :  { %v524_v0 = vadd.f32 1.0, %v1885_v19 }
  0xfc   :  { %v461_v17 = vpop.f32.mrf.mxu2  ;;  %v494_v41 = vsel %vm493_vm4, %v1881_v24, %v490_v38 }
  0xfd   :  { %v1887_v13 = vpop.eup %1886  ;;  %1888 = vrcp.f32 %v524_v0  ;;  %v480_v29 = vadd.f32 %v461_v17, %v239_v9  ;;  %v536_v38 = vand.u32 2147483648, %v524_v0  ;;  %vm530_vm10 = vweird.f32 %v524_v0 }
  0xfe   :  { %v506_v10 = vmul.f32 %v1887_v13, %v504_v46  ;;  %vm511_vm3 = vweird.f32 %v1887_v13  ;;  %v534_v24 = vand.u32 2147483647, %v524_v0 }
  0xff   :  { %1890 = vtanh.f32 %v480_v29  ;;  %vm512_vm6 = vmor %vm510_vm5, %vm511_vm3  ;;  %v499_v29 = vsel %vm496_vm7, %v498_v33, %v494_v41 }
 0x100   :  { %v507_v31 = vsub.f32 1.0, %v506_v10  ;;  %vm535_vm12 = vcmp.eq.f32.partialorder %v534_v24, 8.507059e+37 }
 0x102   :  { %v508_v50 = vmul.f32 %v1887_v13, %v507_v31 }
 0x103   :  { %v1889_v19 = vpop.eup %1888 }
 0x104   :  { %v526_v62 = vmul.f32 %v1889_v19, %v524_v0  ;;  %v509_v48 = vadd.f32 %v1887_v13, %v508_v50  ;;  %v463_v10 = vpop.f32.mrf.mxu2  ;;  %vm531_vm9 = vweird.f32 %v1889_v19 }
 0x105   :  { %v1891_v17 = vpop.eup %1890  ;;  %vm532_vm11 = vmor %vm530_vm10, %vm531_vm9 }
 0x106   :  { %v527_v9 = vsub.f32 1.0, %v526_v62  ;;  %v513_v7 = vsel %vm512_vm6, %v1887_v13, %v509_v48  ;;  %v541_v63 = vmul.f32 %v1891_v17, %v499_v29  ;;  %v537_v13 = vor.u32 1.1754944e-38, %v536_v38 }
 0x107   :  { %v518_v31 = vsel %vm515_vm8, %v517_v56, %v513_v7  ;;  %v270_v48 = vadd.f32 %v2310_v22, %v2312_v25 }
 0x108   :  { %v528_v4 = vmul.f32 %v1889_v19, %v527_v9  ;;  %v540_v15 = vmul.f32 0.0, %v518_v31 }
 0x10a   :  { %v2370_v12 = vadd.f32 %v541_v63, %v540_v15  ;;  %v529_v46 = vadd.f32 %v1889_v19, %v528_v4  ;;  %v182_v15 = vpop.f32.mrf.mxu0 }
 0x10b   :  { %v183_v56 = vadd.f32 %v182_v15, %v2298_v14 }
 0x10c   :  { %1892 = vtanh.f32 %v2370_v12  ;;  %v533_v36 = vsel %vm532_vm11, %v1889_v19, %v529_v46 }
 0x10d   :  { %v538_v50 = vsel %vm535_vm12, %v537_v13, %v533_v36 }
 0x112   :  { %v1893_v27 = vpop.eup %1892 }
 0x113   :  { %v2373_v33 = vmul.f32 %v1893_v27, %v538_v50 }
 0x115   :  { %v553_v63 = vpack.c.bf16 %v2373_v33, %v2373_v33 }
 0x117   :  { %1745 = vmatmul.msk.bf16.vlgmr.msrb.gmra.mxu0 %vm422_vm13, %v553_v63  ;;  %1746 = vmatmul.msk.bf16.vlgmr.msrb.gmra.mxu1 %vm422_vm13, %v553_v63 }
 0x118   :  { %1747 = vmatmul.msk.bf16.vlgmr.msrb.gmra.mxu2 %vm422_vm13, %v553_v63  ;;  %1748 = vmatmul.msk.bf16.vlgmr.msrb.gmra.mxu3 %vm422_vm13, %v553_v63 }
 0x119   :  { %825 = vmatpush.bf16.msrb.mxu0 %v2178_v23  ;;  %838 = vmatpush.bf16.msrb.mxu1 %v2187_v35 }
 0x11a   :  { %851 = vmatpush.bf16.msrb.mxu2 %v2191_v39  ;;  %864 = vmatpush.bf16.msrb.mxu3 %v2235_v57 }
 0x11d   :  { %826 = vmatpush.bf16.msrb.mxu0 %v2181_v34  ;;  %839 = vmatpush.bf16.msrb.mxu1 %v2199_v44 }
 0x11e   :  { %852 = vmatpush.bf16.msrb.mxu2 %v2218_v49  ;;  %865 = vmatpush.bf16.msrb.mxu3 %v2244_v2 }
 0x121   :  { %827 = vmatpush.bf16.msrb.mxu0 %v2195_v43  ;;  %840 = vmatpush.bf16.msrb.mxu1 %v2220_v53 }
 0x122   :  { %853 = vmatpush.bf16.msrb.mxu2 %v2239_v61  ;;  %866 = vmatpush.bf16.msrb.mxu3 %v2250_v5 }
 0x125   :  { %828 = vmatpush.bf16.msrb.mxu0 %v2222_v54  ;;  %841 = vmatpush.bf16.msrb.mxu1 %v2242_v1 }
 0x126   :  { %854 = vmatpush.bf16.msrb.mxu2 %v2265_v11  ;;  %867 = vmatpush.bf16.msrb.mxu3 %v2254_v8 }
 0x194   :  { %v566_v0 = vpop.f32.mrf.mxu0  ;;  %v579_v59 = vpop.f32.mrf.mxu1 }
 0x195   :  { %v609_v42 = vadd.f32 %v566_v0, %v183_v56  ;;  %v610_v19 = vadd.f32 %v579_v59, %v2320_v32 }
 0x197   :  { %v1749_v62 = vmul.f32 -1.442695, %v609_v42  ;;  %v1750_v41 = vmul.f32 -1.442695, %v610_v19 }
 0x199   :  { %1894 = vpow2.f32 %v1749_v62 }
 0x19a   :  { %1896 = vpow2.f32 %v1750_v41 }
 0x19b   :  { %v592_v9 = vpop.f32.mrf.mxu2  ;;  %v605_v7 = vpop.f32.mrf.mxu3 }
 0x19c   :  { %v612_v10 = vadd.f32 %v605_v7, %v270_v48  ;;  %v568_v17 = vpop.f32.mrf.mxu0  ;;  %v581_v29 = vpop.f32.mrf.mxu1  ;;  %v611_v22 = vadd.f32 %v592_v9, %v2336_v51 }
 0x19e   :  { %v1751_v31 = vmul.f32 -1.442695, %v612_v10 }
 0x19f   :  { %v1895_v4 = vpop.eup %1894 }
 0x1a0   :  { %v1897_v46 = vpop.eup %1896  ;;  %v616_v38 = vadd.f32 1.0, %v1895_v4  ;;  %1898 = vpow2.f32 %v1751_v31 }
 0x1a1   :  { %v635_v24 = vadd.f32 1.0, %v1897_v46 }
 0x1a2   :  { %1900 = vrcp.f32 %v616_v38  ;;  %v628_v59 = vand.u32 2147483648, %v616_v38  ;;  %v626_v62 = vand.u32 2147483647, %v616_v38  ;;  %vm622_vm0 = vweird.f32 %v616_v38 }
 0x1a3   :  { %1902 = vrcp.f32 %v635_v24  ;;  %v594_v32 = vpop.f32.mrf.mxu2  ;;  %v607_v36 = vpop.f32.mrf.mxu3  ;;  %v647_v42 = vand.u32 2147483648, %v635_v24  ;;  %v645_v48 = vand.u32 2147483647, %v635_v24  ;;  %vm641_vm1 = vweird.f32 %v635_v24 }
 0x1a4   :  { %v629_v51 = vor.u32 1.1754944e-38, %v628_v59  ;;  %vm627_vm4 = vcmp.eq.f32.partialorder %v626_v62, 8.507059e+37 }
 0x1a5   :  { %v648_v29 = vor.u32 1.1754944e-38, %v647_v42  ;;  %vm646_vm5 = vcmp.eq.f32.partialorder %v645_v48, 8.507059e+37 }
 0x1a6   :  { %v1899_v13 = vpop.eup %1898 }
 0x1a7   :  { %v655_v27 = vadd.f32 1.0, %v1899_v13 }
 0x1a8   :  { %v1901_v50 = vpop.eup %1900 }
 0x1a9   :  { %v1903_v25 = vpop.eup %1902  ;;  %v618_v63 = vmul.f32 %v1901_v50, %v616_v38  ;;  %1904 = vrcp.f32 %v655_v27  ;;  %vm623_vm14 = vweird.f32 %v1901_v50  ;;  %vm661_vm7 = vweird.f32 %v655_v27 }
 0x1aa   :  { %v637_v15 = vmul.f32 %v1903_v25, %v635_v24  ;;  %1906 = vtanh.f32 %v611_v22  ;;  %vm642_vm15 = vweird.f32 %v1903_v25  ;;  %vm624_vm2 = vmor %vm622_vm0, %vm623_vm14 }
 0x1ab   :  { %v619_v56 = vsub.f32 1.0, %v618_v63  ;;  %vm643_vm3 = vmor %vm641_vm1, %vm642_vm15 }
 0x1ac   :  { %v638_v0 = vsub.f32 1.0, %v637_v15 }
 0x1ad   :  { %v620_v19 = vmul.f32 %v1901_v50, %v619_v56  ;;  %v667_v56 = vand.u32 2147483648, %v655_v27 }
 0x1ae   :  { %v639_v41 = vmul.f32 %v1903_v25, %v638_v0 }
 0x1af   :  { %v1905_v7 = vpop.eup %1904  ;;  %v621_v10 = vadd.f32 %v1901_v50, %v620_v19  ;;  %v668_v59 = vor.u32 1.1754944e-38, %v667_v56 }
 0x1b0   :  { %v640_v9 = vadd.f32 %v1903_v25, %v639_v41  ;;  %v657_v17 = vmul.f32 %v1905_v7, %v655_v27  ;;  %v1907_v4 = vpop.eup %1906  ;;  %vm662_vm6 = vweird.f32 %v1905_v7 }
 0x1b1   :  { %v625_v31 = vsel %vm624_vm2, %v1901_v50, %v621_v10  ;;  %v665_v50 = vand.u32 2147483647, %v655_v27  ;;  %vm663_vm8 = vmor %vm661_vm7, %vm662_vm6 }
 0x1b2   :  { %v630_v46 = vsel %vm627_vm4, %v629_v51, %v625_v31  ;;  %v644_v32 = vsel %vm643_vm3, %v1903_v25, %v640_v9  ;;  %v658_v36 = vsub.f32 1.0, %v657_v17 }
 0x1b3   :  { %v649_v13 = vsel %vm646_vm5, %v648_v29, %v644_v32  ;;  %v672_v22 = vmul.f32 %v1907_v4, %v630_v46  ;;  %vm666_vm9 = vcmp.eq.f32.partialorder %v665_v50, 8.507059e+37 }
 0x1b4   :  { %v671_v63 = vmul.f32 %v649_v13, %v2370_v12  ;;  %v659_v15 = vmul.f32 %v1905_v7, %v658_v36 }
 0x1b6   :  { %v2403_v38 = vadd.f32 %v672_v22, %v671_v63  ;;  %v660_v24 = vadd.f32 %v1905_v7, %v659_v15 }
 0x1b8   :  { %1908 = vtanh.f32 %v2403_v38  ;;  %v664_v0 = vsel %vm663_vm8, %v1905_v7, %v660_v24 }
 0x1b9   :  { %v669_v42 = vsel %vm666_vm9, %v668_v59, %v664_v0 }
 0x1be   :  { %v1909_v25 = vpop.eup %1908 }
 0x1bf   :  { %v2406_v19 = vmul.f32 %v1909_v25, %v669_v42 }
 0x1c1   :  { %v685_v12 = vpack.c.bf16 %v2406_v19, %v2406_v19 }
 0x1c3   :  { %1752 = vmatmul.msk.bf16.vlgmr.msra.gmra.mxu0 %vm422_vm13, %v685_v12  ;;  %1753 = vmatmul.msk.bf16.vlgmr.msra.gmra.mxu1 %vm422_vm13, %v685_v12 }
 0x1c4   :  { %1754 = vmatmul.msk.bf16.vlgmr.msra.gmra.mxu2 %vm422_vm13, %v685_v12  ;;  %1755 = vmatmul.msk.bf16.vlgmr.msra.gmra.mxu3 %vm422_vm13, %v685_v12 }
 0x1c5   :  { %957 = vmatpush.bf16.msra.mxu0 %v2178_v23  ;;  %970 = vmatpush.bf16.msra.mxu1 %v2187_v35 }
 0x1c6   :  { %983 = vmatpush.bf16.msra.mxu2 %v2191_v39  ;;  %996 = vmatpush.bf16.msra.mxu3 %v2235_v57 }
 0x1c9   :  { %958 = vmatpush.bf16.msra.mxu0 %v2181_v34  ;;  %971 = vmatpush.bf16.msra.mxu1 %v2199_v44 }
 0x1ca   :  { %984 = vmatpush.bf16.msra.mxu2 %v2218_v49  ;;  %997 = vmatpush.bf16.msra.mxu3 %v2244_v2 }
 0x1cd   :  { %959 = vmatpush.bf16.msra.mxu0 %v2195_v43  ;;  %972 = vmatpush.bf16.msra.mxu1 %v2220_v53 }
 0x1ce   :  { %985 = vmatpush.bf16.msra.mxu2 %v2239_v61  ;;  %998 = vmatpush.bf16.msra.mxu3 %v2250_v5 }
 0x1d1   :  { %960 = vmatpush.bf16.msra.mxu0 %v2222_v54  ;;  %973 = vmatpush.bf16.msra.mxu1 %v2242_v1 }
 0x1d2   :  { %986 = vmatpush.bf16.msra.mxu2 %v2265_v11  ;;  %999 = vmatpush.bf16.msra.mxu3 %v2254_v8 }
 0x240   :  { %v698_v27 = vpop.f32.mrf.mxu0  ;;  %v711_v62 = vpop.f32.mrf.mxu1 }
 0x241   :  { %v741_v41 = vadd.f32 %v698_v27, %v2301_v16  ;;  %v742_v48 = vadd.f32 %v711_v62, %v2327_v40 }
 0x243   :  { %v1756_v7 = vmul.f32 -1.442695, %v741_v41  ;;  %v1757_v10 = vmul.f32 -1.442695, %v742_v48 }
 0x245   :  { %1910 = vpow2.f32 %v1756_v7 }
 0x246   :  { %1912 = vpow2.f32 %v1757_v10 }
 0x247   :  { %v724_v51 = vpop.f32.mrf.mxu2  ;;  %v737_v9 = vpop.f32.mrf.mxu3 }
 0x248   :  { %v744_v17 = vadd.f32 %v737_v9, %v2318_v30  ;;  %v700_v29 = vpop.f32.mrf.mxu0  ;;  %v713_v31 = vpop.f32.mrf.mxu1  ;;  %v743_v24 = vadd.f32 %v724_v51, %v2343_v60 }
 0x24a   :  { %v1758_v4 = vmul.f32 -1.442695, %v744_v17 }
 0x24b   :  { %v1911_v46 = vpop.eup %1910 }
 0x24c   :  { %v1913_v32 = vpop.eup %1912  ;;  %v748_v36 = vadd.f32 1.0, %v1911_v46  ;;  %1914 = vpow2.f32 %v1758_v4 }
 0x24d   :  { %v767_v13 = vadd.f32 1.0, %v1913_v32 }
 0x24e   :  { %1916 = vrcp.f32 %v748_v36  ;;  %v760_v25 = vand.u32 2147483648, %v748_v36  ;;  %v758_v27 = vand.u32 2147483647, %v748_v36  ;;  %vm754_vm12 = vweird.f32 %v748_v36 }
 0x24f   :  { %1918 = vrcp.f32 %v767_v13  ;;  %v726_v16 = vpop.f32.mrf.mxu2  ;;  %v739_v40 = vpop.f32.mrf.mxu3  ;;  %v779_v42 = vand.u32 2147483648, %v767_v13  ;;  %v777_v41 = vand.u32 2147483647, %v767_v13  ;;  %vm773_vm14 = vweird.f32 %v767_v13 }
 0x250   :  { %v761_v60 = vor.u32 1.1754944e-38, %v760_v25  ;;  %vm759_vm1 = vcmp.eq.f32.partialorder %v758_v27, 8.507059e+37 }
 0x251   :  { %v780_v9 = vor.u32 1.1754944e-38, %v779_v42  ;;  %vm778_vm2 = vcmp.eq.f32.partialorder %v777_v41, 8.507059e+37 }
 0x252   :  { %v1915_v22 = vpop.eup %1914 }
 0x253   :  { %v787_v63 = vadd.f32 1.0, %v1915_v22 }
 0x254   :  { %v1917_v15 = vpop.eup %1916 }
 0x255   :  { %v1919_v56 = vpop.eup %1918  ;;  %v750_v50 = vmul.f32 %v1917_v15, %v748_v36  ;;  %1920 = vrcp.f32 %v787_v63  ;;  %vm755_vm10 = vweird.f32 %v1917_v15  ;;  %vm793_vm4 = vweird.f32 %v787_v63 }
 0x256   :  { %v769_v30 = vmul.f32 %v1919_v56, %v767_v13  ;;  %1922 = vtanh.f32 %v743_v24  ;;  %vm774_vm11 = vweird.f32 %v1919_v56  ;;  %vm756_vm15 = vmor %vm754_vm12, %vm755_vm10  ;;  %v799_v24 = vand.u32 2147483648, %v787_v63 }
 0x257   :  { %v751_v0 = vsub.f32 1.0, %v750_v50  ;;  %vm775_vm0 = vmor %vm773_vm14, %vm774_vm11 }
 0x258   :  { %v770_v59 = vsub.f32 1.0, %v769_v30  ;;  %v800_v30 = vor.u32 1.1754944e-38, %v799_v24 }
 0x259   :  { %v752_v12 = vmul.f32 %v1917_v15, %v751_v0 }
 0x25a   :  { %v771_v62 = vmul.f32 %v1919_v56, %v770_v59 }
 0x25b   :  { %v1921_v48 = vpop.eup %1920  ;;  %v753_v7 = vadd.f32 %v1917_v15, %v752_v12 }
 0x25c   :  { %v772_v10 = vadd.f32 %v1919_v56, %v771_v62  ;;  %v789_v51 = vmul.f32 %v1921_v48, %v787_v63  ;;  %v1923_v29 = vpop.eup %1922  ;;  %vm794_vm3 = vweird.f32 %v1921_v48 }
 0x25d   :  { %v757_v17 = vsel %vm756_vm15, %v1917_v15, %v753_v7  ;;  %v797_v15 = vand.u32 2147483647, %v787_v63  ;;  %vm795_vm5 = vmor %vm793_vm4, %vm794_vm3  ;;  %v188_v63 = vadd.f32 %v2306_v20, %v2298_v14 }
 0x25e   :  { %v762_v31 = vsel %vm759_vm1, %v761_v60, %v757_v17  ;;  %v776_v4 = vsel %vm775_vm0, %v1919_v56, %v772_v10  ;;  %v790_v46 = vsub.f32 1.0, %v789_v51 }
 0x25f   :  { %v781_v32 = vsel %vm778_vm2, %v780_v9, %v776_v4  ;;  %v804_v16 = vmul.f32 %v1923_v29, %v762_v31  ;;  %vm798_vm6 = vcmp.eq.f32.partialorder %v797_v15, 8.507059e+37 }
 0x260   :  { %v803_v40 = vmul.f32 %v781_v32, %v2403_v38  ;;  %v791_v22 = vmul.f32 %v1921_v48, %v790_v46 }
 0x262   :  { %v2435_v36 = vadd.f32 %v804_v16, %v803_v40  ;;  %v792_v13 = vadd.f32 %v1921_v48, %v791_v22 }
 0x264   :  { %1924 = vtanh.f32 %v2435_v36  ;;  %v796_v50 = vsel %vm795_vm5, %v1921_v48, %v792_v13 }
 0x265   :  { %v801_v0 = vsel %vm798_vm6, %v800_v30, %v796_v50 }
 0x26a   :  { %v1925_v56 = vpop.eup %1924 }
 0x26b   :  { %v2438_v59 = vmul.f32 %v1925_v56, %v801_v0 }
 0x26d   :  { %v817_v38 = vpack.c.bf16 %v2438_v59, %v2438_v59 }
 0x26f   :  { %1759 = vmatmul.msk.bf16.vlgmr.msrb.gmra.mxu0 %vm422_vm13, %v817_v38  ;;  %1760 = vmatmul.msk.bf16.vlgmr.msrb.gmra.mxu1 %vm422_vm13, %v817_v38 }
 0x270   :  { %1761 = vmatmul.msk.bf16.vlgmr.msrb.gmra.mxu2 %vm422_vm13, %v817_v38  ;;  %1762 = vmatmul.msk.bf16.vlgmr.msrb.gmra.mxu3 %vm422_vm13, %v817_v38 }
 0x271   :  { %1089 = vmatpush.bf16.msrb.mxu0 %v2178_v23  ;;  %1102 = vmatpush.bf16.msrb.mxu1 %v2187_v35 }
 0x272   :  { %1115 = vmatpush.bf16.msrb.mxu2 %v2191_v39  ;;  %1128 = vmatpush.bf16.msrb.mxu3 %v2235_v57 }
 0x275   :  { %1090 = vmatpush.bf16.msrb.mxu0 %v2181_v34  ;;  %1103 = vmatpush.bf16.msrb.mxu1 %v2199_v44 }
 0x276   :  { %1116 = vmatpush.bf16.msrb.mxu2 %v2218_v49  ;;  %1129 = vmatpush.bf16.msrb.mxu3 %v2244_v2 }
 0x279   :  { %1091 = vmatpush.bf16.msrb.mxu0 %v2195_v43  ;;  %1104 = vmatpush.bf16.msrb.mxu1 %v2220_v53 }
 0x27a   :  { %1117 = vmatpush.bf16.msrb.mxu2 %v2239_v61  ;;  %1130 = vmatpush.bf16.msrb.mxu3 %v2250_v5 }
 0x27d   :  { %1092 = vmatpush.bf16.msrb.mxu0 %v2222_v54  ;;  %1105 = vmatpush.bf16.msrb.mxu1 %v2242_v1 }
 0x27e   :  { %1118 = vmatpush.bf16.msrb.mxu2 %v2265_v11  ;;  %1131 = vmatpush.bf16.msrb.mxu3 %v2254_v8 }
 0x2ec   :  { %v830_v25 = vpop.f32.mrf.mxu0  ;;  %v843_v42 = vpop.f32.mrf.mxu1 }
 0x2ed   :  { %v873_v12 = vadd.f32 %v830_v25, %v188_v63  ;;  %v874_v27 = vadd.f32 %v843_v42, %v2334_v47 }
 0x2ef   :  { %v1763_v62 = vmul.f32 -1.442695, %v873_v12  ;;  %v1764_v41 = vmul.f32 -1.442695, %v874_v27 }
 0x2f1   :  { %1926 = vpow2.f32 %v1763_v62 }
 0x2f2   :  { %1928 = vpow2.f32 %v1764_v41 }
 0x2f3   :  { %v856_v48 = vpop.f32.mrf.mxu2  ;;  %v869_v7 = vpop.f32.mrf.mxu3 }
 0x2f4   :  { %v876_v60 = vadd.f32 %v869_v7, %v2325_v37  ;;  %v832_v10 = vpop.f32.mrf.mxu0  ;;  %v845_v51 = vpop.f32.mrf.mxu1  ;;  %v875_v40 = vadd.f32 %v856_v48, %v2350_v6 }
 0x2f6   :  { %v1765_v9 = vmul.f32 -1.442695, %v876_v60 }
 0x2f7   :  { %v1927_v17 = vpop.eup %1926 }
 0x2f8   :  { %v1929_v29 = vpop.eup %1928  ;;  %v880_v31 = vadd.f32 1.0, %v1927_v17  ;;  %1930 = vpow2.f32 %v1765_v9 }
 0x2f9   :  { %v899_v20 = vadd.f32 1.0, %v1929_v29 }
 0x2fa   :  { %1932 = vrcp.f32 %v880_v31  ;;  %v892_v50 = vand.u32 2147483648, %v880_v31  ;;  %v890_v0 = vand.u32 2147483647, %v880_v31  ;;  %vm886_vm9 = vweird.f32 %v880_v31 }
 0x2fb   :  { %1934 = vrcp.f32 %v899_v20  ;;  %v858_v4 = vpop.f32.mrf.mxu2  ;;  %v871_v47 = vpop.f32.mrf.mxu3  ;;  %v911_v30 = vand.u32 2147483648, %v899_v20  ;;  %v909_v63 = vand.u32 2147483647, %v899_v20  ;;  %vm905_vm10 = vweird.f32 %v899_v20 }
 0x2fc   :  { %v893_v6 = vor.u32 1.1754944e-38, %v892_v50  ;;  %vm891_vm14 = vcmp.eq.f32.partialorder %v890_v0, 8.507059e+37 }
 0x2fd   :  { %v912_v62 = vor.u32 1.1754944e-38, %v911_v30  ;;  %vm910_vm15 = vcmp.eq.f32.partialorder %v909_v63, 8.507059e+37 }
 0x2fe   :  { %v1931_v46 = vpop.eup %1930 }
 0x2ff   :  { %v919_v32 = vadd.f32 1.0, %v1931_v46 }
 0x300   :  { %v1933_v16 = vpop.eup %1932 }
 0x301   :  { %v1935_v22 = vpop.eup %1934  ;;  %v882_v13 = vmul.f32 %v1933_v16, %v880_v31  ;;  %1936 = vrcp.f32 %v919_v32  ;;  %vm887_vm7 = vweird.f32 %v1933_v16  ;;  %v931_v4 = vand.u32 2147483648, %v919_v32 }
 0x302   :  { %v901_v37 = vmul.f32 %v1935_v22, %v899_v20  ;;  %1938 = vtanh.f32 %v875_v40  ;;  %vm906_vm8 = vweird.f32 %v1935_v22  ;;  %vm888_vm11 = vmor %vm886_vm9, %vm887_vm7  ;;  %vm925_vm1 = vweird.f32 %v919_v32 }
 0x303   :  { %v883_v24 = vsub.f32 1.0, %v882_v13  ;;  %vm907_vm12 = vmor %vm905_vm10, %vm906_vm8  ;;  %v929_v47 = vand.u32 2147483647, %v919_v32 }
 0x304   :  { %v902_v15 = vsub.f32 1.0, %v901_v37 }
 0x305   :  { %v884_v56 = vmul.f32 %v1933_v16, %v883_v24  ;;  %vm930_vm3 = vcmp.eq.f32.partialorder %v929_v47, 8.507059e+37 }
 0x306   :  { %v903_v38 = vmul.f32 %v1935_v22, %v902_v15 }
 0x307   :  { %v1937_v25 = vpop.eup %1936  ;;  %v885_v42 = vadd.f32 %v1933_v16, %v884_v56 }
 0x308   :  { %v904_v12 = vadd.f32 %v1935_v22, %v903_v38  ;;  %v921_v27 = vmul.f32 %v1937_v25, %v919_v32  ;;  %v1939_v48 = vpop.eup %1938  ;;  %vm926_vm0 = vweird.f32 %v1937_v25 }
 0x309   :  { %v889_v41 = vsel %vm888_vm11, %v1933_v16, %v885_v42  ;;  %vm927_vm2 = vmor %vm925_vm1, %vm926_vm0  ;;  %v932_v16 = vor.u32 1.1754944e-38, %v931_v4 }
 0x30a   :  { %v894_v7 = vsel %vm891_vm14, %v893_v6, %v889_v41  ;;  %v908_v60 = vsel %vm907_vm12, %v1935_v22, %v904_v12  ;;  %v922_v10 = vsub.f32 1.0, %v921_v27 }
 0x30b   :  { %v913_v51 = vsel %vm910_vm15, %v912_v62, %v908_v60  ;;  %v936_v9 = vmul.f32 %v1939_v48, %v894_v7 }
 0x30c   :  { %v935_v17 = vmul.f32 %v913_v51, %v2435_v36  ;;  %v923_v29 = vmul.f32 %v1937_v25, %v922_v10 }
 0x30e   :  { %v2468_v31 = vadd.f32 %v936_v9, %v935_v17  ;;  %v924_v20 = vadd.f32 %v1937_v25, %v923_v29 }
 0x310   :  { %1940 = vtanh.f32 %v2468_v31  ;;  %v928_v46 = vsel %vm927_vm2, %v1937_v25, %v924_v20 }
 0x311   :  { %v933_v22 = vsel %vm930_vm3, %v932_v16, %v928_v46 }
 0x316   :  { %v1941_v40 = vpop.eup %1940 }
 0x317   :  { %v2471_v13 = vmul.f32 %v1941_v40, %v933_v22 }
 0x319   :  { %v949_v36 = vpack.c.bf16 %v2471_v13, %v2471_v13 }
 0x31b   :  { %1766 = vmatmul.msk.bf16.vlgmr.msra.gmra.mxu0 %vm422_vm13, %v949_v36  ;;  %1767 = vmatmul.msk.bf16.vlgmr.msra.gmra.mxu1 %vm422_vm13, %v949_v36 }
 0x31c   :  { %1768 = vmatmul.msk.bf16.vlgmr.msra.gmra.mxu2 %vm422_vm13, %v949_v36  ;;  %1769 = vmatmul.msk.bf16.vlgmr.msra.gmra.mxu3 %vm422_vm13, %v949_v36 }
 0x31d   :  { %1221 = vmatpush.bf16.msra.mxu0 %v2178_v23  ;;  %1234 = vmatpush.bf16.msra.mxu1 %v2187_v35 }
 0x31e   :  { %1247 = vmatpush.bf16.msra.mxu2 %v2191_v39  ;;  %1260 = vmatpush.bf16.msra.mxu3 %v2235_v57 }
 0x321   :  { %1222 = vmatpush.bf16.msra.mxu0 %v2181_v34  ;;  %1235 = vmatpush.bf16.msra.mxu1 %v2199_v44 }
 0x322   :  { %1248 = vmatpush.bf16.msra.mxu2 %v2218_v49  ;;  %1261 = vmatpush.bf16.msra.mxu3 %v2244_v2 }
 0x325   :  { %1223 = vmatpush.bf16.msra.mxu0 %v2195_v43  ;;  %1236 = vmatpush.bf16.msra.mxu1 %v2220_v53 }
 0x326   :  { %1249 = vmatpush.bf16.msra.mxu2 %v2239_v61  ;;  %1262 = vmatpush.bf16.msra.mxu3 %v2250_v5 }
 0x329   :  { %1224 = vmatpush.bf16.msra.mxu0 %v2222_v54  ;;  %1237 = vmatpush.bf16.msra.mxu1 %v2242_v1 }
 0x32a   :  { %1250 = vmatpush.bf16.msra.mxu2 %v2265_v11  ;;  %1263 = vmatpush.bf16.msra.mxu3 %v2254_v8 }
 0x398   :  { %v962_v32 = vpop.f32.mrf.mxu0  ;;  %v975_v37 = vpop.f32.mrf.mxu1 }
 0x399   :  { %v1005_v24 = vadd.f32 %v962_v32, %v2304_v18  ;;  %v1006_v15 = vadd.f32 %v975_v37, %v2341_v58 }
 0x39b   :  { %v1770_v50 = vmul.f32 -1.442695, %v1005_v24  ;;  %v1771_v30 = vmul.f32 -1.442695, %v1006_v15 }
 0x39d   :  { %1942 = vpow2.f32 %v1770_v50 }
 0x39e   :  { %1944 = vpow2.f32 %v1771_v30 }
 0x39f   :  { %v988_v56 = vpop.f32.mrf.mxu2  ;;  %v1001_v0 = vpop.f32.mrf.mxu3 }
 0x3a0   :  { %v1008_v38 = vadd.f32 %v1001_v0, %v2332_v45  ;;  %v964_v63 = vpop.f32.mrf.mxu0  ;;  %v977_v25 = vpop.f32.mrf.mxu1  ;;  %v1007_v60 = vadd.f32 %v988_v56, %v2358_v26 }
 0x3a2   :  { %v1772_v42 = vmul.f32 -1.442695, %v1008_v38 }
 0x3a3   :  { %v1943_v6 = vpop.eup %1942 }
 0x3a4   :  { %v1945_v12 = vpop.eup %1944  ;;  %v1012_v27 = vadd.f32 1.0, %v1943_v6  ;;  %1946 = vpow2.f32 %v1772_v42 }
 0x3a5   :  { %v1031_v62 = vadd.f32 1.0, %v1945_v12 }
 0x3a6   :  { %1948 = vrcp.f32 %v1012_v27  ;;  %v1024_v29 = vand.u32 2147483648, %v1012_v27  ;;  %v1022_v47 = vand.u32 2147483647, %v1012_v27  ;;  %vm1018_vm6 = vweird.f32 %v1012_v27 }
 0x3a7   :  { %1950 = vrcp.f32 %v1031_v62  ;;  %v990_v18 = vpop.f32.mrf.mxu2  ;;  %v1003_v58 = vpop.f32.mrf.mxu3  ;;  %v1043_v20 = vand.u32 2147483648, %v1031_v62  ;;  %v1041_v16 = vand.u32 2147483647, %v1031_v62  ;;  %vm1037_vm7 = vweird.f32 %v1031_v62 }
 0x3a8   :  { %v1025_v26 = vor.u32 1.1754944e-38, %v1024_v29  ;;  %vm1023_vm10 = vcmp.eq.f32.partialorder %v1022_v47, 8.507059e+37 }
 0x3a9   :  { %v1044_v37 = vor.u32 1.1754944e-38, %v1043_v20  ;;  %vm1042_vm11 = vcmp.eq.f32.partialorder %v1041_v16, 8.507059e+37 }
 0x3aa   :  { %v1947_v41 = vpop.eup %1946 }
 0x3ab   :  { %v1051_v48 = vadd.f32 1.0, %v1947_v41 }
 0x3ac   :  { %v1949_v7 = vpop.eup %1948 }
 0x3ad   :  { %v1951_v10 = vpop.eup %1950  ;;  %v1014_v51 = vmul.f32 %v1949_v7, %v1012_v27  ;;  %1952 = vrcp.f32 %v1051_v48  ;;  %vm1019_vm4 = vweird.f32 %v1949_v7  ;;  %v1063_v12 = vand.u32 2147483648, %v1051_v48 }
 0x3ae   :  { %v1033_v45 = vmul.f32 %v1951_v10, %v1031_v62  ;;  %1954 = vtanh.f32 %v1007_v60  ;;  %vm1038_vm5 = vweird.f32 %v1951_v10  ;;  %vm1020_vm8 = vmor %vm1018_vm6, %vm1019_vm4  ;;  %vm1057_vm14 = vweird.f32 %v1051_v48 }
 0x3af   :  { %v1015_v9 = vsub.f32 1.0, %v1014_v51  ;;  %vm1039_vm9 = vmor %vm1037_vm7, %vm1038_vm5  ;;  %v1061_v27 = vand.u32 2147483647, %v1051_v48  ;;  %v1064_v18 = vor.u32 1.1754944e-38, %v1063_v12 }
 0x3b0   :  { %v1034_v17 = vsub.f32 1.0, %v1033_v45 }
 0x3b1   :  { %v1016_v4 = vmul.f32 %v1949_v7, %v1015_v9  ;;  %vm1062_vm0 = vcmp.eq.f32.partialorder %v1061_v27, 8.507059e+37 }
 0x3b2   :  { %v1035_v46 = vmul.f32 %v1951_v10, %v1034_v17 }
 0x3b3   :  { %v1953_v40 = vpop.eup %1952  ;;  %v1017_v22 = vadd.f32 %v1949_v7, %v1016_v4 }
 0x3b4   :  { %v1036_v36 = vadd.f32 %v1951_v10, %v1035_v46  ;;  %v1053_v32 = vmul.f32 %v1953_v40, %v1051_v48  ;;  %v1955_v15 = vpop.eup %1954  ;;  %vm1058_vm12 = vweird.f32 %v1953_v40 }
 0x3b5   :  { %v1021_v24 = vsel %vm1020_vm8, %v1949_v7, %v1017_v22  ;;  %vm1059_vm15 = vmor %vm1057_vm14, %vm1058_vm12 }
 0x3b6   :  { %v1026_v50 = vsel %vm1023_vm10, %v1025_v26, %v1021_v24  ;;  %v1040_v30 = vsel %vm1039_vm9, %v1951_v10, %v1036_v36  ;;  %v1054_v56 = vsub.f32 1.0, %v1053_v32 }
 0x3b7   :  { %v1045_v0 = vsel %vm1042_vm11, %v1044_v37, %v1040_v30  ;;  %v1068_v38 = vmul.f32 %v1955_v15, %v1026_v50 }
 0x3b8   :  { %v1067_v63 = vmul.f32 %v1045_v0, %v2468_v31  ;;  %v1055_v25 = vmul.f32 %v1953_v40, %v1054_v56 }
 0x3ba   :  { %v2500_v42 = vadd.f32 %v1068_v38, %v1067_v63  ;;  %v1056_v6 = vadd.f32 %v1953_v40, %v1055_v25 }
 0x3bc   :  { %1956 = vtanh.f32 %v2500_v42  ;;  %v1060_v62 = vsel %vm1059_vm15, %v1953_v40, %v1056_v6 }
 0x3bd   :  { %v1065_v41 = vsel %vm1062_vm0, %v1064_v18, %v1060_v62 }
 0x3c2   :  { %v1957_v58 = vpop.eup %1956 }
 0x3c3   :  { %v2503_v7 = vmul.f32 %v1957_v58, %v1065_v41 }
 0x3c5   :  { %v1081_v31 = vpack.c.bf16 %v2503_v7, %v2503_v7 }
 0x3c7   :  { %1773 = vmatmul.msk.bf16.vlgmr.msrb.gmra.mxu0 %vm422_vm13, %v1081_v31  ;;  %1774 = vmatmul.msk.bf16.vlgmr.msrb.gmra.mxu1 %vm422_vm13, %v1081_v31 }
 0x3c8   :  { %1775 = vmatmul.msk.bf16.vlgmr.msrb.gmra.mxu2 %vm422_vm13, %v1081_v31  ;;  %1776 = vmatmul.msk.bf16.vlgmr.msrb.gmra.mxu3 %vm422_vm13, %v1081_v31 }
 0x3c9   :  { %1353 = vmatpush.bf16.msrb.mxu0 %v2178_v23  ;;  %1366 = vmatpush.bf16.msrb.mxu1 %v2187_v35  ;;  %v193_v23 = vadd.f32 %v2308_v21, %v2298_v14 }
 0x3ca   :  { %1379 = vmatpush.bf16.msrb.mxu2 %v2191_v39  ;;  %1392 = vmatpush.bf16.msrb.mxu3 %v2235_v57 }
 0x3cd   :  { %1354 = vmatpush.bf16.msrb.mxu0 %v2181_v34  ;;  %1367 = vmatpush.bf16.msrb.mxu1 %v2199_v44 }
 0x3ce   :  { %1380 = vmatpush.bf16.msrb.mxu2 %v2218_v49  ;;  %1393 = vmatpush.bf16.msrb.mxu3 %v2244_v2 }
 0x3d1   :  { %1355 = vmatpush.bf16.msrb.mxu0 %v2195_v43  ;;  %1368 = vmatpush.bf16.msrb.mxu1 %v2220_v53 }
 0x3d2   :  { %1381 = vmatpush.bf16.msrb.mxu2 %v2239_v61  ;;  %1394 = vmatpush.bf16.msrb.mxu3 %v2250_v5 }
 0x3d5   :  { %1356 = vmatpush.bf16.msrb.mxu0 %v2222_v54  ;;  %1369 = vmatpush.bf16.msrb.mxu1 %v2242_v1 }
 0x3d6   :  { %1382 = vmatpush.bf16.msrb.mxu2 %v2265_v11  ;;  %1395 = vmatpush.bf16.msrb.mxu3 %v2254_v8 }
 0x444   :  { %v1094_v34 = vpop.f32.mrf.mxu0  ;;  %v1107_v35 = vpop.f32.mrf.mxu1 }
 0x445   :  { %v1137_v39 = vadd.f32 %v1094_v34, %v193_v23  ;;  %v1138_v43 = vadd.f32 %v1107_v35, %v2348_v3  ;;  %v1861_v35 = vld [vmem:[#allocation9 + $0x38] sm:$0xff] }
 0x447   :  { %v1777_v44 = vmul.f32 -1.442695, %v1137_v39  ;;  %v1778_v49 = vmul.f32 -1.442695, %v1138_v43 }
 0x449   :  { %1958 = vpow2.f32 %v1777_v44 }
 0x44a   :  { %1960 = vpow2.f32 %v1778_v49  ;;  %v2603_v49 = vld [vmem:[#allocation17_spill] sm:$0xff] }
 0x44b   :  { %v1120_v53 = vpop.f32.mrf.mxu2  ;;  %v1133_v54 = vpop.f32.mrf.mxu3 }
 0x44c   :  { %v1140_v57 = vadd.f32 %v1133_v54, %v2339_v55  ;;  %v1096_v61 = vpop.f32.mrf.mxu0  ;;  %v1109_v1 = vpop.f32.mrf.mxu1  ;;  %v1139_v45 = vadd.f32 %v1120_v53, %v2362_v52 }
 0x44d   :  { %v1860_v61 = vld [vmem:[#allocation9 + $0x30] sm:$0xff]  ;;  %v1859_v1 = vld [vmem:[#allocation9 + $0x28] sm:$0xff] }
 0x44e   :  { %v1779_v2 = vmul.f32 -1.442695, %v1140_v57 }
 0x44f   :  { %v1959_v5 = vpop.eup %1958 }
 0x450   :  { %v1961_v8 = vpop.eup %1960  ;;  %v1144_v11 = vadd.f32 1.0, %v1959_v5  ;;  %1962 = vpow2.f32 %v1779_v2 }
 0x451   :  { %v1163_v21 = vadd.f32 1.0, %v1961_v8  ;;  %v2604_v8 = vld [vmem:[#allocation15_spill] sm:$0xff] }
 0x452   :  { %1964 = vrcp.f32 %v1144_v11  ;;  %v1156_v4 = vand.u32 2147483648, %v1144_v11  ;;  %v1154_v16 = vand.u32 2147483647, %v1144_v11  ;;  %vm1150_vm3 = vweird.f32 %v1144_v11 }
 0x453   :  { %1966 = vrcp.f32 %v1163_v21  ;;  %v1122_v48 = vpop.f32.mrf.mxu2  ;;  %v1135_v3 = vpop.f32.mrf.mxu3  ;;  %v1175_v47 = vand.u32 2147483648, %v1163_v21  ;;  %v1173_v22 = vand.u32 2147483647, %v1163_v21  ;;  %vm1169_vm4 = vweird.f32 %v1163_v21 }
 0x454   :  { %v1157_v52 = vor.u32 1.1754944e-38, %v1156_v4  ;;  %vm1155_vm7 = vcmp.eq.f32.partialorder %v1154_v16, 8.507059e+37  ;;  %v1858_v3 = vld [vmem:[#allocation9 + $0x20] sm:$0xff] }
 0x455   :  { %v1176_v24 = vor.u32 1.1754944e-38, %v1175_v47  ;;  %vm1174_vm8 = vcmp.eq.f32.partialorder %v1173_v22, 8.507059e+37 }
 0x456   :  { %v1963_v60 = vpop.eup %1962 }
 0x457   :  { %v1183_v10 = vadd.f32 1.0, %v1963_v60 }
 0x458   :  { %v1965_v51 = vpop.eup %1964 }
 0x459   :  { %v1967_v9 = vpop.eup %1966  ;;  %v1146_v17 = vmul.f32 %v1965_v51, %v1144_v11  ;;  %1968 = vrcp.f32 %v1183_v10  ;;  %vm1151_vm1 = vweird.f32 %v1965_v51  ;;  %v1195_v62 = vand.u32 2147483648, %v1183_v10 }
 0x45a   :  { %v1165_v55 = vmul.f32 %v1967_v9, %v1163_v21  ;;  %1970 = vtanh.f32 %v1139_v45  ;;  %vm1170_vm2 = vweird.f32 %v1967_v9  ;;  %vm1152_vm5 = vmor %vm1150_vm3, %vm1151_vm1  ;;  %vm1189_vm10 = vweird.f32 %v1183_v10 }
 0x45b   :  { %v1147_v29 = vsub.f32 1.0, %v1146_v17  ;;  %vm1171_vm6 = vmor %vm1169_vm4, %vm1170_vm2  ;;  %v1193_v18 = vand.u32 2147483647, %v1183_v10  ;;  %v1196_v41 = vor.u32 1.1754944e-38, %v1195_v62 }
 0x45c   :  { %v1166_v20 = vsub.f32 1.0, %v1165_v55  ;;  %v1857_v55 = vld [vmem:[#allocation9 + $0x18] sm:$0xff] }
 0x45d   :  { %v1148_v46 = vmul.f32 %v1965_v51, %v1147_v29  ;;  %vm1194_vm12 = vcmp.eq.f32.partialorder %v1193_v18, 8.507059e+37  ;;  %v1856_v29 = vld [vmem:[#allocation9 + $0x10] sm:$0xff] }
 0x45e   :  { %v1167_v40 = vmul.f32 %v1967_v9, %v1166_v20 }
 0x45f   :  { %v1969_v26 = vpop.eup %1968  ;;  %v1149_v36 = vadd.f32 %v1965_v51, %v1148_v46  ;;  %v2605_v46 = vld [vmem:[#allocation19_spill] sm:$0xff] }
 0x460   :  { %v1168_v32 = vadd.f32 %v1967_v9, %v1167_v40  ;;  %v1185_v37 = vmul.f32 %v1969_v26, %v1183_v10  ;;  %v1971_v50 = vpop.eup %1970  ;;  %vm1190_vm9 = vweird.f32 %v1969_v26 }
 0x461   :  { %v1153_v15 = vsel %vm1152_vm5, %v1965_v51, %v1149_v36  ;;  %vm1191_vm11 = vmor %vm1189_vm10, %vm1190_vm9 }
 0x462   :  { %v1158_v30 = vsel %vm1155_vm7, %v1157_v52, %v1153_v15  ;;  %v1172_v56 = vsel %vm1171_vm6, %v1967_v9, %v1168_v32  ;;  %v1186_v0 = vsub.f32 1.0, %v1185_v37 }
 0x463   :  { %v1177_v38 = vsel %vm1174_vm8, %v1176_v24, %v1172_v56  ;;  %v1200_v63 = vmul.f32 %v1971_v50, %v1158_v30  ;;  %v1854_v30 = vld [vmem:[#allocation9] sm:$0xff] }
 0x464   :  { %v1199_v25 = vmul.f32 %v1177_v38, %v2500_v42  ;;  %v1187_v6 = vmul.f32 %v1969_v26, %v1186_v0 }
 0x466   :  { %v2533_v12 = vadd.f32 %v1200_v63, %v1199_v25  ;;  %v1188_v27 = vadd.f32 %v1969_v26, %v1187_v6 }
 0x468   :  { %1972 = vtanh.f32 %v2533_v12  ;;  %v1192_v58 = vsel %vm1191_vm11, %v1969_v26, %v1188_v27  ;;  %v1855_v26 = vld [vmem:[#allocation9 + $0x8] sm:$0xff] }
 0x469   :  { %v1197_v23 = vsel %vm1194_vm12, %v1196_v41, %v1192_v58 }
 0x46e   :  { %v1973_v31 = vpop.eup %1972 }
 0x46f   :  { %v2536_v34 = vmul.f32 %v1973_v31, %v1197_v23 }
 0x471   :  { %v1213_v42 = vpack.c.bf16 %v2536_v34, %v2536_v34 }
 0x473   :  { %1780 = vmatmul.msk.bf16.vlgmr.msra.gmra.mxu0 %vm422_vm13, %v1213_v42  ;;  %1781 = vmatmul.msk.bf16.vlgmr.msra.gmra.mxu1 %vm422_vm13, %v1213_v42 }
 0x474   :  { %1782 = vmatmul.msk.bf16.vlgmr.msra.gmra.mxu2 %vm422_vm13, %v1213_v42  ;;  %1783 = vmatmul.msk.bf16.vlgmr.msra.gmra.mxu3 %vm422_vm13, %v1213_v42 }
 0x475   :  { %1550 = vmatpush.bf16.msra.mxu0 %v1861_v35 }
 0x479   :  { %1551 = vmatpush.bf16.msra.mxu0 %v1860_v61 }
 0x47d   :  { %1552 = vmatpush.bf16.msra.mxu0 %v1859_v1 }
 0x481   :  { %1553 = vmatpush.bf16.msra.mxu0 %v1858_v3 }
 0x485   :  { %1554 = vmatpush.bf16.msra.mxu0 %v1857_v55 }
 0x489   :  { %1555 = vmatpush.bf16.msra.mxu0 %v1856_v29 }
 0x48d   :  { %1556 = vmatpush.bf16.msra.mxu0 %v1855_v26 }
 0x491   :  { %1557 = vmatpush.bf16.msra.mxu0 %v1854_v30 }
 0x4f0   :  { %v1226_v39 = vpop.f32.mrf.mxu0  ;;  %v1239_v43 = vpop.f32.mrf.mxu1 }
 0x4f1   :  { %v1269_v44 = vadd.f32 %v1226_v39, %v2315_v28  ;;  %v1270_v53 = vadd.f32 %v1239_v43, %v2603_v49 }
 0x4f3   :  { %v1784_v54 = vmul.f32 -1.442695, %v1269_v44  ;;  %v1785_v57 = vmul.f32 -1.442695, %v1270_v53 }
 0x4f5   :  { %1974 = vpow2.f32 %v1784_v54 }
 0x4f6   :  { %1976 = vpow2.f32 %v1785_v57 }
 0x4f7   :  { %v1252_v2 = vpop.f32.mrf.mxu2  ;;  %v1265_v5 = vpop.f32.mrf.mxu3 }
 0x4f8   :  { %v1272_v11 = vadd.f32 %v1265_v5, %v2604_v8  ;;  %v1228_v21 = vpop.f32.mrf.mxu0  ;;  %v1241_v48 = vpop.f32.mrf.mxu1  ;;  %v1271_v16 = vadd.f32 %v1252_v2, %v2605_v46  ;;  %v1478_v8 = vpack.c.bf16 %v2406_v19, %v2373_v33 }
 0x4f9   :  { %v1480_v21 = vpack.c.bf16 %v2536_v34, %v2503_v7  ;;  %v2606_v48 = vld [vmem:[#allocation14_spill] sm:$0xff] }
 0x4fa   :  { %v1786_v60 = vmul.f32 -1.442695, %v1272_v11  ;;  %v1479_v11 = vpack.c.bf16 %v2471_v13, %v2438_v59  ;;  %v198_v3 = vadd.f32 %v2606_v48, %v2298_v14  ;;  %v2608_v59 = vld [vmem:[#allocation16_spill] sm:$0xff] }
 0x4fb   :  { %v1975_v28 = vpop.eup %1974 }
 0x4fc   :  { %v1977_v10 = vpop.eup %1976  ;;  %v1276_v51 = vadd.f32 1.0, %v1975_v28  ;;  %1978 = vpow2.f32 %v1786_v60 }
 0x4fd   :  { %v1295_v45 = vadd.f32 1.0, %v1977_v10 }
 0x4fe   :  { %1980 = vrcp.f32 %v1276_v51  ;;  %v1288_v37 = vand.u32 2147483648, %v1276_v51  ;;  %v1286_v50 = vand.u32 2147483647, %v1276_v51  ;;  %vm1282_vm0 = vweird.f32 %v1276_v51 }
 0x4ff   :  { %1982 = vrcp.f32 %v1295_v45  ;;  %v1254_v9 = vpop.f32.mrf.mxu2  ;;  %v1267_v17 = vpop.f32.mrf.mxu3  ;;  %v1307_v24 = vand.u32 2147483648, %v1295_v45  ;;  %v1305_v0 = vand.u32 2147483647, %v1295_v45  ;;  %vm1301_vm1 = vweird.f32 %v1295_v45 }
 0x500   :  { %v1289_v25 = vor.u32 1.1754944e-38, %v1288_v37  ;;  %vm1287_vm4 = vcmp.eq.f32.partialorder %v1286_v50, 8.507059e+37 }
 0x501   :  { %v1308_v62 = vor.u32 1.1754944e-38, %v1307_v24  ;;  %vm1306_vm5 = vcmp.eq.f32.partialorder %v1305_v0, 8.507059e+37 }
 0x502   :  { %v1979_v20 = vpop.eup %1978 }
 0x503   :  { %v1315_v4 = vadd.f32 1.0, %v1979_v20 }
 0x504   :  { %v1981_v47 = vpop.eup %1980 }
 0x505   :  { %v1983_v40 = vpop.eup %1982  ;;  %v1278_v22 = vmul.f32 %v1981_v47, %v1276_v51  ;;  %1984 = vrcp.f32 %v1315_v4  ;;  %vm1283_vm14 = vweird.f32 %v1981_v47  ;;  %v1327_v53 = vand.u32 2147483648, %v1315_v4  ;;  %v2607_v51 = vld [vmem:[#allocation18_spill] sm:$0xff] }
 0x506   :  { %v1297_v36 = vmul.f32 %v1983_v40, %v1295_v45  ;;  %1986 = vtanh.f32 %v1271_v16  ;;  %vm1302_vm15 = vweird.f32 %v1983_v40  ;;  %vm1284_vm2 = vmor %vm1282_vm0, %vm1283_vm14  ;;  %vm1321_vm7 = vweird.f32 %v1315_v4 }
 0x507   :  { %v1279_v52 = vsub.f32 1.0, %v1278_v22  ;;  %vm1303_vm3 = vmor %vm1301_vm1, %vm1302_vm15  ;;  %v1325_v54 = vand.u32 2147483647, %v1315_v4  ;;  %v1328_v61 = vor.u32 1.1754944e-38, %v1327_v53 }
 0x508   :  { %v1298_v32 = vsub.f32 1.0, %v1297_v36 }
 0x509   :  { %v1280_v15 = vmul.f32 %v1981_v47, %v1279_v52  ;;  %vm1326_vm9 = vcmp.eq.f32.partialorder %v1325_v54, 8.507059e+37 }
 0x50a   :  { %v1299_v56 = vmul.f32 %v1983_v40, %v1298_v32  ;;  %v2609_v32 = vld [vmem:[#allocation20_spill] sm:$0xff] }
 0x50b   :  { %v1985_v38 = vpop.eup %1984  ;;  %v1281_v63 = vadd.f32 %v1981_v47, %v1280_v15 }
 0x50c   :  { %v1300_v6 = vadd.f32 %v1983_v40, %v1299_v56  ;;  %v1317_v27 = vmul.f32 %v1985_v38, %v1315_v4  ;;  %v1987_v58 = vpop.eup %1986  ;;  %vm1322_vm6 = vweird.f32 %v1985_v38 }
 0x50d   :  { %v1285_v18 = vsel %vm1284_vm2, %v1981_v47, %v1281_v63  ;;  %vm1323_vm8 = vmor %vm1321_vm7, %vm1322_vm6  ;;  %v2573_v47 = vld [vmem:[%s2594_s5] ss:$0 sm:$0xff]  ;;  %s2116_s5 = smov [#allocation10]  }
 0x50e   :  { %v1290_v41 = vsel %vm1287_vm4, %v1289_v25, %v1285_v18  ;;  %v1304_v31 = vsel %vm1303_vm3, %v1983_v40, %v1300_v6  ;;  %v1318_v23 = vsub.f32 1.0, %v1317_v27  ;;  %s1591_s23 = sshll.u32 %s2116_s5, 4  ;;  %s1592_s23 = int_to_ptr.vmem [resolvable:$true] %s1591_s23 }
 0x50f   :  { %v1309_v42 = vsel %vm1306_vm5, %v1308_v62, %v1304_v31  ;;  %v1332_v35 = vmul.f32 %v1987_v58, %v1290_v41 }
 0x510   :  { %v1331_v39 = vmul.f32 %v1309_v42, %v2533_v12  ;;  %v1319_v43 = vmul.f32 %v1985_v38, %v1318_v23 }
 0x512   :  { %v2549_v44 = vadd.f32 %v1332_v35, %v1331_v39  ;;  %v1320_v49 = vadd.f32 %v1985_v38, %v1319_v43 }
 0x514   :  { %1988 = vtanh.f32 %v2549_v44  ;;  %v1324_v57 = vsel %vm1323_vm8, %v1985_v38, %v1320_v49 }
 0x515   :  { %v1329_v2 = vsel %vm1326_vm9, %v1328_v61, %v1324_v57 }
 0x51a   :  { %v1989_v1 = vpop.eup %1988 }
 0x51b   :  { %v2552_v5 = vmul.f32 %v1989_v1, %v1329_v2 }
 0x51d   :  { %v1345_v12 = vpack.c.bf16 %v2552_v5, %v2552_v5 }
 0x51f   :  { %1787 = vmatmul.msk.bf16.vlgmr.msrb.gmra.mxu0 %vm422_vm13, %v1345_v12  ;;  %1788 = vmatmul.msk.bf16.vlgmr.msrb.gmra.mxu1 %vm422_vm13, %v1345_v12 }
 0x520   :  { %1789 = vmatmul.msk.bf16.vlgmr.msrb.gmra.mxu2 %vm422_vm13, %v1345_v12  ;;  %1790 = vmatmul.msk.bf16.vlgmr.msrb.gmra.mxu3 %vm422_vm13, %v1345_v12 }
 0x52f   :  { %1558 = vmatmul.bf16.vlgmr.msra.gmra.mxu0 %v1478_v8 }
 0x53f   :  { %1563 = vmatmul.bf16.gmra.mxu0 %v1479_v11 }
 0x54f   :  { %1568 = vmatmul.bf16.gmra.mxu0 %v1480_v21 }
 0x59c   :  { %v1358_v60 = vpop.f32.mrf.mxu0  ;;  %v1371_v28 = vpop.f32.mrf.mxu1 }
 0x59d   :  { %v1401_v10 = vadd.f32 %v1358_v60, %v198_v3  ;;  %v1402_v45 = vadd.f32 %v1371_v28, %v2607_v51 }
 0x59f   :  { %v1791_v9 = vmul.f32 -1.442695, %v1401_v10  ;;  %v1792_v17 = vmul.f32 -1.442695, %v1402_v45 }
 0x5a1   :  { %1990 = vpow2.f32 %v1791_v9 }
 0x5a2   :  { %1992 = vpow2.f32 %v1792_v17 }
 0x5a3   :  { %v1384_v33 = vpop.f32.mrf.mxu2  ;;  %v1397_v19 = vpop.f32.mrf.mxu3 }
 0x5a4   :  { %v1404_v13 = vadd.f32 %v1397_v19, %v2608_v59  ;;  %v1360_v55 = vpop.f32.mrf.mxu0  ;;  %v1373_v29 = vpop.f32.mrf.mxu1  ;;  %v1403_v37 = vadd.f32 %v1384_v33, %v2609_v32 }
 0x5a6   :  { %v1793_v7 = vmul.f32 -1.442695, %v1404_v13 }
 0x5a7   :  { %v1991_v34 = vpop.eup %1990 }
 0x5a8   :  { %v1993_v20 = vpop.eup %1992  ;;  %v1408_v4 = vadd.f32 1.0, %v1991_v34  ;;  %1994 = vpow2.f32 %v1793_v7 }
 0x5a9   :  { %v1427_v14 = vadd.f32 1.0, %v1993_v20 }
 0x5aa   :  { %1996 = vrcp.f32 %v1408_v4  ;;  %v1418_v0 = vand.u32 2147483647, %v1408_v4  ;;  %v1420_v38 = vand.u32 2147483648, %v1408_v4  ;;  %vm1414_vm11 = vweird.f32 %v1408_v4 }
 0x5ab   :  { %1998 = vrcp.f32 %v1427_v14  ;;  %v1386_v46 = vpop.f32.mrf.mxu2  ;;  %v1399_v16 = vpop.f32.mrf.mxu3  ;;  %v1439_v25 = vand.u32 2147483648, %v1427_v14  ;;  %v1437_v18 = vand.u32 2147483647, %v1427_v14  ;;  %vm1433_vm12 = vweird.f32 %v1427_v14 }
 0x5ac   :  { %v1559_v40 = vpop.f32.mrf.mxu0  ;;  %v1421_v31 = vor.u32 1.1754944e-38, %v1420_v38  ;;  %vm1419_vm0 = vcmp.eq.f32.partialorder %v1418_v0, 8.507059e+37 }
 0x5ad   :  { %v1560_v22 = vadd.f32 %v2573_v47, %v1559_v40  ;;  %v1440_v35 = vor.u32 1.1754944e-38, %v1439_v25  ;;  %vm1438_vm1 = vcmp.eq.f32.partialorder %v1437_v18, 8.507059e+37 }
 0x5ae   :  { %v1995_v26 = vpop.eup %1994 }
 0x5af   :  { %v1447_v36 = vadd.f32 1.0, %v1995_v26  ;;  %1579 = vst [vmem:[#allocation10] sm:$0xff] %v1560_v22 }
 0x5b0   :  { %v1997_v52 = vpop.eup %1996 }
 0x5b1   :  { %v1999_v24 = vpop.eup %1998  ;;  %v1410_v15 = vmul.f32 %v1997_v52, %v1408_v4  ;;  %2000 = vrcp.f32 %v1447_v36  ;;  %vm1415_vm13 = vweird.f32 %v1997_v52  ;;  %v1459_v48 = vand.u32 2147483648, %v1447_v36 }
 0x5b2   :  { %v1429_v50 = vmul.f32 %v1999_v24, %v1427_v14  ;;  %2002 = vtanh.f32 %v1403_v37  ;;  %vm1434_vm10 = vweird.f32 %v1999_v24  ;;  %vm1416_vm14 = vmor %vm1414_vm11, %vm1415_vm13  ;;  %vm1453_vm3 = vweird.f32 %v1447_v36 }
 0x5b3   :  { %v1411_v30 = vsub.f32 1.0, %v1410_v15  ;;  %vm1435_vm15 = vmor %vm1433_vm12, %vm1434_vm10  ;;  %v1457_v3 = vand.u32 2147483647, %v1447_v36  ;;  %v1460_v10 = vor.u32 1.1754944e-38, %v1459_v48 }
 0x5b4   :  { %v1430_v56 = vsub.f32 1.0, %v1429_v50  ;;  %v1561_v63 = vpop.f32.mrf.mxu0 }
 0x5b5   :  { %v1412_v6 = vmul.f32 %v1997_v52, %v1411_v30  ;;  %v1562_v27 = vadd.f32 %v2573_v47, %v1561_v63  ;;  %vm1458_vm5 = vcmp.eq.f32.partialorder %v1457_v3, 8.507059e+37 }
 0x5b6   :  { %v1431_v62 = vmul.f32 %v1999_v24, %v1430_v56 }
 0x5b7   :  { %v2001_v58 = vpop.eup %2000  ;;  %v1413_v41 = vadd.f32 %v1997_v52, %v1412_v6  ;;  %1580 = vst [vmem:[#allocation10 + $0x8] sm:$0xff] %v1562_v27 }
 0x5b8   :  { %v1432_v23 = vadd.f32 %v1999_v24, %v1431_v62  ;;  %v1449_v42 = vmul.f32 %v2001_v58, %v1447_v36  ;;  %v2003_v43 = vpop.eup %2002  ;;  %vm1454_vm2 = vweird.f32 %v2001_v58 }
 0x5b9   :  { %v1417_v39 = vsel %vm1416_vm14, %v1997_v52, %v1413_v41  ;;  %vm1455_vm4 = vmor %vm1453_vm3, %vm1454_vm2 }
 0x5ba   :  { %v1422_v49 = vsel %vm1419_vm0, %v1421_v31, %v1417_v39  ;;  %v1436_v53 = vsel %vm1435_vm15, %v1999_v24, %v1432_v23  ;;  %v1450_v54 = vsub.f32 1.0, %v1449_v42 }
 0x5bb   :  { %v1441_v57 = vsel %vm1438_vm1, %v1440_v35, %v1436_v53  ;;  %v1464_v61 = vmul.f32 %v2003_v43, %v1422_v49 }
 0x5bc   :  { %v1463_v1 = vmul.f32 %v1441_v57, %v2549_v44  ;;  %v1564_v2 = vpop.f32.mrf.mxu0  ;;  %v1451_v12 = vmul.f32 %v2001_v58, %v1450_v54 }
 0x5bd   :  { %v1565_v8 = vadd.f32 %v2573_v47, %v1564_v2 }
 0x5be   :  { %v1465_v11 = vadd.f32 %v1464_v61, %v1463_v1  ;;  %v1452_v21 = vadd.f32 %v2001_v58, %v1451_v12 }
 0x5bf   :  { %1581 = vst [vmem:[#allocation10 + $0x10] sm:$0xff] %v1565_v8 }
 0x5c0   :  { %2004 = vtanh.f32 %v1465_v11  ;;  %v1456_v60 = vsel %vm1455_vm4, %v2001_v58, %v1452_v21 }
 0x5c1   :  { %v1461_v45 = vsel %vm1458_vm5, %v1460_v10, %v1456_v60 }
 0x5c4   :  { %v1566_v28 = vpop.f32.mrf.mxu0 }
 0x5c5   :  { %v1567_v51 = vadd.f32 %v2573_v47, %v1566_v28 }
 0x5c6   :  { %v2005_v44 = vpop.eup %2004 }
 0x5c7   :  { %1582 = vst [vmem:[#allocation10 + $0x18] sm:$0xff] %v1567_v51  ;;  %v1467_v9 = vmul.f32 %v2005_v44, %v1461_v45 }
 0x5c9   :  { %v1481_v17 = vpack.c.bf16 %v1467_v9, %v2552_v5 }
 0x5cb   :  { %1573 = vmatmul.bf16.gmra.mxu0 %v1481_v17 }
 0x5cc   :  { %v1569_v33 = vpop.f32.mrf.mxu0 }
 0x5cd   :  { %v1570_v19 = vadd.f32 %v2573_v47, %v1569_v33 }
 0x5cf   :  { %1583 = vst [vmem:[#allocation10 + $0x20] sm:$0xff] %v1570_v19 }
 0x5d4   :  { %v1571_v59 = vpop.f32.mrf.mxu0 }
 0x5d5   :  { %v1572_v13 = vadd.f32 %v2573_v47, %v1571_v59 }
 0x5d7   :  { %1584 = vst [vmem:[#allocation10 + $0x28] sm:$0xff] %v1572_v13 }
 0x648   :  { %v1574_v55 = vpop.f32.mrf.mxu0 }
 0x649   :  { %v1575_v29 = vadd.f32 %v2573_v47, %v1574_v55 }
 0x64b   :  { %1585 = vst [vmem:[#allocation10 + $0x30] sm:$0xff] %v1575_v29 }
 0x650   :  { %v1576_v5 = vpop.f32.mrf.mxu0 }
 0x651   :  { %v1577_v7 = vadd.f32 %v2573_v47, %v1576_v5 }
 0x653   :  { %1586 = vst [vmem:[#allocation10 + $0x38] sm:$0xff] %v1577_v7 }
 0x654   :  { %1599 = dma.vmem_to_hbm [thread:$0]  %s1592_s23, 1024, %s1594_s26, [#allocation6], %s2117_s27, %s2117_s27, %s2118_s28  }
 0x655   :  { %2106 = dma.done.wait [#allocation6], 1024  }
 0x656   :  { %2107 = vsyncadd [#allocation6], 4294966272 }
 0x657   :  { %1604 = vsyncpa [#allocation5], 1 }
 0x658   :  { %1605 = vsyncpa [#allocation8], 1 }
 0x659   :  { %1606 = vsyncpa [#allocation6], 1 }

</bundles_post_ra>
